<compile_context>
chip_gen: v7x
topology: tpu7x:2x2x1
jax: 0.10.0
libtpu: 0.0.40
codegen_flags: <defaults>
</compile_context>

<pallas_src>
import math

import jax
import jax.numpy as jnp
from jax import lax
from jax.experimental import pallas as pl
from jax.experimental.pallas import tpu as pltpu


C = 32   # channels, fixed by the module (Conv1d(32, 32, 4, ...))
K = 4    # conv kernel size, fixed by the module


def _elu(v):
    # alpha = 1; clamp the exp argument so the untaken branch cannot overflow.
    return jnp.where(v > 0, v, jnp.exp(jnp.minimum(v, 0.0)) - 1.0)


def make_tcn_kernel(depth, T, n_blk):
    dilations = [1 if lvl == 0 else 2 ** lvl for lvl in range(depth)]

    def tcn_kernel(x_ref, w_ref, shift_ref, out_ref, im2col_ref):
        # x_ref:      (1, C, n_blk)        TB batch elements packed along lanes
        # w_ref:      (2*depth, C, K*C)    BN-scale-folded conv weights (resident)
        # shift_ref:  (2*depth, C, n_blk)  folded bias+BN shift, pre-broadcast
        # out_ref:    (1, C, n_blk)
        # im2col_ref: (K*C, n_blk)         VMEM scratch = matmul RHS operand
        x = x_ref[0]                                            # (C, n_blk)
        # Per-element local time index (hoisted once). T is a power of two in
        # the demo, so `% T` lowers to a cheap bitwise mask.
        t_local = lax.broadcasted_iota(jnp.int32, (C, n_blk), 1) % T

        def causal_conv_bn(h, layer, dilation, masks):
            # In-register im2col written straight into the matmul operand
            # buffer: tap k = h shifted right by (K-1-k)*dilation, causal-zeroed
            # per packed batch element.
            for k in range(K):
                s = (K - 1 - k) * dilation
                if s == 0:
                    tap = h
                else:
                    rolled = pltpu.roll(h, shift=s, axis=1)     # XLU, free slot
                    tap = jnp.where(masks[k], rolled, 0.0)
                im2col_ref[pl.ds(k * C, C), :] = tap
            y = jnp.dot(w_ref[layer], im2col_ref[...],
                        preferred_element_type=jnp.float32)     # one MXU matmul
            return y + shift_ref[layer]                         # folded bias+BN

        block = x
        for lvl in range(depth):
            d = dilations[lvl]
            # Hoisted causal masks: both convs in this level share them. Using
            # the per-element time index keeps rolls from leaking the previous
            # packed element's tail into the first (K-1)*d steps of the next.
            masks = [None if (K - 1 - k) == 0 else (t_local >= (K - 1 - k) * d)
                     for k in range(K)]
            h = _elu(causal_conv_bn(block, 2 * lvl, d, masks))
            # TODO(synk): Dropout(0.3) applies here in PyTorch training mode;
            # this kernel implements eval-mode semantics (dropout == identity).
            h = _elu(causal_conv_bn(h, 2 * lvl + 1, d, masks))
            block = _elu(h + block)                             # residual + ELU
        out_ref[0] = block

    return tcn_kernel


def tcn_block_forward(x, params, *, depth=2, eps=1e-5, batch_pack=2,
                      interpret=False):
    """x: (B, C, T) float32. params: list of 2*depth dicts with keys
    w (C,C,K), b (C,), gamma, beta, mean, var (all (C,)). Returns (B, C, T)."""
    B, Cx, T = x.shape
    assert Cx == C and len(params) == 2 * depth
    L2 = 2 * depth

    # Fold conv bias + eval-mode BatchNorm into the weights (scale) and a
    # per-channel shift:  scale*(Wx + b - mean) + beta = (scale*W)x + shift.
    w_list, sh_list = [], []
    for p in params:
        s = p["gamma"] / jnp.sqrt(p["var"] + eps)                      # (C,)
        w_flat = jnp.transpose(p["w"], (0, 2, 1)).reshape(C, K * C)    # [co, k*C+ci]
        w_list.append(w_flat * s[:, None])                             # scale folded
        sh_list.append(p["beta"] + s * (p["b"] - p["mean"]))
    w_all = jnp.stack(w_list).astype(jnp.float32)                      # (L2, C, K*C)
    shift = jnp.stack(sh_list).astype(jnp.float32)                     # (L2, C)

    # Pack TB batch elements along the lane (time) axis per grid step so each
    # conv matmul has N = TB*T lanes (>=256 fills the v6e/v7x MXU width) and
    # per-step grid overhead is amortized; keep grid >= 2 for v7x's two TCs.
    tb = max(1, min(batch_pack, B))
    Bp = ((B + tb - 1) // tb) * tb
    xp = x if Bp == B else jnp.pad(x, ((0, Bp - B), (0, 0), (0, 0)))
    G = Bp // tb
    n_blk = tb * T
    x_packed = xp.reshape(G, tb, C, T).transpose(0, 2, 1, 3).reshape(G, C, n_blk)
    # Pre-broadcast the shift to lane width -> plain vreg add in the kernel.
    shift_b = jnp.broadcast_to(shift[:, :, None], (L2, C, n_blk)).astype(jnp.float32)

    kernel = make_tcn_kernel(depth, T, n_blk)

    flops = 2 * Bp * L2 * C * (K * C) * T + 8 * Bp * depth * C * T
    transcendentals = 3 * Bp * depth * C * T                           # ELU exps
    bytes_accessed = 4 * (2 * Bp * C * T + w_all.size + shift_b.size)

    grid_spec = pltpu.PrefetchScalarGridSpec(
        num_scalar_prefetch=0,
        grid=(G,),
        in_specs=[
            pl.BlockSpec((1, C, n_blk), lambda g: (g, 0, 0)),          # packed x
            pl.BlockSpec((L2, C, K * C), lambda g: (0, 0, 0)),         # weights
            pl.BlockSpec((L2, C, n_blk), lambda g: (0, 0, 0)),         # shifts
        ],
        out_specs=pl.BlockSpec((1, C, n_blk), lambda g: (g, 0, 0)),
        scratch_shapes=[pltpu.VMEM((K * C, n_blk), jnp.float32)],      # im2col
    )

    out_packed = pl.pallas_call(
        kernel,
        grid_spec=grid_spec,
        out_shape=jax.ShapeDtypeStruct((G, C, n_blk), jnp.float32),
        compiler_params=pltpu.CompilerParams(
            dimension_semantics=("parallel",)),                        # 2 TCs on v7x
        cost_estimate=pl.CostEstimate(
            flops=flops, transcendentals=transcendentals,
            bytes_accessed=bytes_accessed),
        interpret=interpret,
    )(x_packed, w_all, shift_b)

    out = out_packed.reshape(G, C, tb, T).transpose(0, 2, 1, 3).reshape(Bp, C, T)
    return out[:B]


def init_params(key, depth=2):
    """Deterministic params matching torch inits: conv weight kaiming_uniform_
    (nonlinearity='linear'), conv bias U(+-1/sqrt(fan_in)); BatchNorm running
    stats / affine get non-trivial values so the folding is exercised."""
    params = []
    fan_in = C * K
    w_bound = math.sqrt(3.0 / fan_in)            # kaiming_uniform, gain=1
    b_bound = 1.0 / math.sqrt(fan_in)
    for lk in jax.random.split(key, 2 * depth):
        k1, k2, k3, k4, k5, k6 = jax.random.split(lk, 6)
        params.append(dict(
            w=jax.random.uniform(k1, (C, C, K), jnp.float32, -w_bound, w_bound),
            b=jax.random.uniform(k2, (C,), jnp.float32, -b_bound, b_bound),
            gamma=jax.random.uniform(k3, (C,), jnp.float32, 0.5, 1.5),
            beta=0.1 * jax.random.normal(k4, (C,), jnp.float32),
            mean=0.1 * jax.random.normal(k5, (C,), jnp.float32),
            var=jax.random.uniform(k6, (C,), jnp.float32, 0.5, 1.5),
        ))
    return params


def reference_tcn(x, params, *, depth=2, eps=1e-5):
    """Plain-JAX mirror of TCN_block.forward (eval mode), using lax conv."""
    def causal_conv(h, w, b, d):
        pad = (K - 1) * d
        hp = jnp.pad(h, ((0, 0), (0, 0), (pad, 0)))
        y = lax.conv_general_dilated(
            hp, w, window_strides=(1,), padding="VALID",
            rhs_dilation=(d,), dimension_numbers=("NCH", "OIH", "NCH"))
        return y + b[None, :, None]

    def bn(h, p):
        s = p["gamma"] / jnp.sqrt(p["var"] + eps)
        return (h - p["mean"][None, :, None]) * s[None, :, None] + p["beta"][None, :, None]

    block = x
    li = 0
    for lvl in range(depth):
        d = 1 if lvl == 0 else 2 ** lvl
        h = block
        for _ in range(2):
            p = params[li]; li += 1
            h = _elu(bn(causal_conv(h, p["w"], p["b"], d), p))
        block = _elu(h + block)
    return block


if __name__ == "__main__":
    # C=32 is fixed by the module; T=128 keeps time lane-dense.  B=4 with
    # batch_pack=2 -> grid=(2,) (both v7x TCs busy) and N=256 per conv matmul
    # (fills v6e/v7x MXU width).
    B, T, DEPTH = 4, 128, 2

    key = jax.random.PRNGKey(0)
    k_x, k_p = jax.random.split(key)
    x = jax.random.normal(k_x, (B, C, T), jnp.float32)
    params = init_params(k_p, depth=DEPTH)

    out = tcn_block_forward(x, params, depth=DEPTH, batch_pack=2)
    jax.block_until_ready(out)

    ref = reference_tcn(x, params, depth=DEPTH)
    assert out.shape == ref.shape
    assert jnp.allclose(out, ref, atol=1e-4, rtol=1e-4), \
        float(jnp.max(jnp.abs(out - ref)))

    print("KERNEL_OK")
</pallas_src>

<mosaic_0001>
module attributes {stable_mosaic.version = 11 : i64} {
  func.func @tcn_kernel(%arg0: i32, %arg1: memref<1x32x256xf32, #tpu.memory_space<vmem>>, %arg2: memref<4x32x128xf32, #tpu.memory_space<vmem>>, %arg3: memref<4x32x256xf32, #tpu.memory_space<vmem>>, %arg4: memref<1x32x256xf32, #tpu.memory_space<vmem>>, %arg5: memref<128x256xf32, #tpu.memory_space<vmem>>) attributes {dimension_semantics = [#tpu.dimension_semantics<parallel>], iteration_bounds = array<i64: 2>, scalar_prefetch = 0 : i64, scratch_operands = 1 : i64, tpu.core_type = #tpu.core_type<tc>, window_params = [{transform_indices = @transform_0, window_bounds = array<i64: 1, 32, 256>}, {pipeline_mode = #tpu.pipeline_mode<synchronous>, transform_indices = @transform_1, window_bounds = array<i64: 4, 32, 128>}, {pipeline_mode = #tpu.pipeline_mode<synchronous>, transform_indices = @transform_2, window_bounds = array<i64: 4, 32, 256>}, {transform_indices = @transform_3, window_bounds = array<i64: 1, 32, 256>}]} {
    %c0 = arith.constant 0 : index
    %c0_0 = arith.constant 0 : index
    %c0_1 = arith.constant 0 : index
    %0 = vector.load %arg1[%c0, %c0_0, %c0_1] : memref<1x32x256xf32, #tpu.memory_space<vmem>>, vector<1x32x256xf32>
    %1 = vector.shape_cast %0 : vector<1x32x256xf32> to vector<32x256xf32>
    %2 = tpu.iota {dimensions = array<i32: 1>} : vector<32x256xi32>
    %c128_i32 = arith.constant 128 : i32
    %c0_i32 = arith.constant 0 : i32
    %3 = arith.cmpi eq, %c128_i32, %c0_i32 : i32
    %c1_i32 = arith.constant 1 : i32
    %4 = arith.select %3, %c1_i32, %c128_i32 : i32
    %5 = vector.broadcast %4 : i32 to vector<32x256xi32>
    %6 = arith.remsi %2, %5 : vector<32x256xi32>
    %c0_i32_2 = arith.constant 0 : i32
    %7 = vector.broadcast %c0_i32_2 : i32 to vector<32x256xi32>
    %8 = arith.cmpi ne, %6, %7 : vector<32x256xi32>
    %c0_i32_3 = arith.constant 0 : i32
    %9 = vector.broadcast %c0_i32_3 : i32 to vector<32x256xi32>
    %10 = arith.cmpi slt, %6, %9 : vector<32x256xi32>
    %c0_i32_4 = arith.constant 0 : i32
    %11 = arith.cmpi slt, %4, %c0_i32_4 : i32
    %12 = vector.broadcast %11 : i1 to vector<32x256xi1>
    %13 = vector.broadcast %12 : vector<32x256xi1> to vector<32x256xi1>
    %14 = arith.xori %10, %13 : vector<32x256xi1>
    %15 = arith.andi %14, %8 : vector<32x256xi1>
    %16 = vector.broadcast %4 : i32 to vector<32x256xi32>
    %17 = arith.addi %6, %16 : vector<32x256xi32>
    %18 = arith.select %15, %17, %6 : vector<32x256xi1>, vector<32x256xi32>
    %c3_i32 = arith.constant 3 : i32
    %19 = vector.broadcast %c3_i32 : i32 to vector<32x256xi32>
    %20 = arith.cmpi sge, %18, %19 : vector<32x256xi32>
    %c2_i32 = arith.constant 2 : i32
    %21 = vector.broadcast %c2_i32 : i32 to vector<32x256xi32>
    %22 = arith.cmpi sge, %18, %21 : vector<32x256xi32>
    %c1_i32_5 = arith.constant 1 : i32
    %23 = vector.broadcast %c1_i32_5 : i32 to vector<32x256xi32>
    %24 = arith.cmpi sge, %18, %23 : vector<32x256xi32>
    %c3_i32_6 = arith.constant 3 : i32
    %25 = tpu.dynamic_rotate %1 by %c3_i32_6 dim 1 : vector<32x256xf32>, i32 -> vector<32x256xf32>
    %cst = arith.constant 0.000000e+00 : f32
    %26 = vector.broadcast %cst : f32 to vector<32x256xf32>
    %27 = arith.select %20, %25, %26 : vector<32x256xi1>, vector<32x256xf32>
    %c0_7 = arith.constant 0 : index
    %c0_8 = arith.constant 0 : index
    %28 = vector.load %arg5[%c0_7, %c0_8] : memref<128x256xf32, #tpu.memory_space<vmem>>, vector<32x256xf32>
    tpu.vector_store %arg5[%c0_7, %c0_8], %27 {strides = array<i32>} : memref<128x256xf32, #tpu.memory_space<vmem>>, vector<32x256xf32>,
    %c2_i32_9 = arith.constant 2 : i32
    %29 = tpu.dynamic_rotate %1 by %c2_i32_9 dim 1 : vector<32x256xf32>, i32 -> vector<32x256xf32>
    %cst_10 = arith.constant 0.000000e+00 : f32
    %30 = vector.broadcast %cst_10 : f32 to vector<32x256xf32>
    %31 = arith.select %22, %29, %30 : vector<32x256xi1>, vector<32x256xf32>
    %c32 = arith.constant 32 : index
    %c0_11 = arith.constant 0 : index
    %32 = vector.load %arg5[%c32, %c0_11] : memref<128x256xf32, #tpu.memory_space<vmem>>, vector<32x256xf32>
    tpu.vector_store %arg5[%c32, %c0_11], %31 {strides = array<i32>} : memref<128x256xf32, #tpu.memory_space<vmem>>, vector<32x256xf32>,
    %c1_i32_12 = arith.constant 1 : i32
    %33 = tpu.dynamic_rotate %1 by %c1_i32_12 dim 1 : vector<32x256xf32>, i32 -> vector<32x256xf32>
    %cst_13 = arith.constant 0.000000e+00 : f32
    %34 = vector.broadcast %cst_13 : f32 to vector<32x256xf32>
    %35 = arith.select %24, %33, %34 : vector<32x256xi1>, vector<32x256xf32>
    %c64 = arith.constant 64 : index
    %c0_14 = arith.constant 0 : index
    %36 = vector.load %arg5[%c64, %c0_14] : memref<128x256xf32, #tpu.memory_space<vmem>>, vector<32x256xf32>
    tpu.vector_store %arg5[%c64, %c0_14], %35 {strides = array<i32>} : memref<128x256xf32, #tpu.memory_space<vmem>>, vector<32x256xf32>,
    %c96 = arith.constant 96 : index
    %c0_15 = arith.constant 0 : index
    %37 = vector.load %arg5[%c96, %c0_15] : memref<128x256xf32, #tpu.memory_space<vmem>>, vector<32x256xf32>
    tpu.vector_store %arg5[%c96, %c0_15], %1 {strides = array<i32>} : memref<128x256xf32, #tpu.memory_space<vmem>>, vector<32x256xf32>,
    %c0_16 = arith.constant 0 : index
    %c0_17 = arith.constant 0 : index
    %c0_18 = arith.constant 0 : index
    %38 = vector.load %arg2[%c0_16, %c0_17, %c0_18] : memref<4x32x128xf32, #tpu.memory_space<vmem>>, vector<1x32x128xf32>
    %39 = vector.shape_cast %38 : vector<1x32x128xf32> to vector<32x128xf32>
    %c0_19 = arith.constant 0 : index
    %c0_20 = arith.constant 0 : index
    %40 = vector.load %arg5[%c0_19, %c0_20] : memref<128x256xf32, #tpu.memory_space<vmem>>, vector<128x256xf32>
    %cst_21 = arith.constant dense<0.000000e+00> : vector<32x256xf32>
    %41 = tpu.matmul %39, %40, %cst_21 {dimension_numbers = #tpu.dot_dimension_numbers<[1], [0], [0], [1], [0, 0, 1, 1], [], []>} : vector<32x128xf32>, vector<128x256xf32>, vector<32x256xf32> -> vector<32x256xf32>
    %c0_22 = arith.constant 0 : index
    %c0_23 = arith.constant 0 : index
    %c0_24 = arith.constant 0 : index
    %42 = vector.load %arg3[%c0_22, %c0_23, %c0_24] : memref<4x32x256xf32, #tpu.memory_space<vmem>>, vector<1x32x256xf32>
    %43 = vector.shape_cast %42 : vector<1x32x256xf32> to vector<32x256xf32>
    %44 = arith.addf %41, %43 : vector<32x256xf32>
    %cst_25 = arith.constant 0.000000e+00 : f32
    %45 = vector.broadcast %cst_25 : f32 to vector<32x256xf32>
    %46 = arith.cmpf ogt, %44, %45 : vector<32x256xf32>
    %cst_26 = arith.constant 0.000000e+00 : f32
    %47 = vector.broadcast %cst_26 : f32 to vector<32x256xf32>
    %48 = arith.minimumf %44, %47 : vector<32x256xf32>
    %49 = math.exp %48 : vector<32x256xf32>
    %cst_27 = arith.constant 1.000000e+00 : f32
    %50 = vector.broadcast %cst_27 : f32 to vector<32x256xf32>
    %51 = arith.subf %49, %50 : vector<32x256xf32>
    %52 = arith.select %46, %44, %51 : vector<32x256xi1>, vector<32x256xf32>
    %c3_i32_28 = arith.constant 3 : i32
    %53 = tpu.dynamic_rotate %52 by %c3_i32_28 dim 1 : vector<32x256xf32>, i32 -> vector<32x256xf32>
    %cst_29 = arith.constant 0.000000e+00 : f32
    %54 = vector.broadcast %cst_29 : f32 to vector<32x256xf32>
    %55 = arith.select %20, %53, %54 : vector<32x256xi1>, vector<32x256xf32>
    %c0_30 = arith.constant 0 : index
    %c0_31 = arith.constant 0 : index
    %56 = vector.load %arg5[%c0_30, %c0_31] : memref<128x256xf32, #tpu.memory_space<vmem>>, vector<32x256xf32>
    tpu.vector_store %arg5[%c0_30, %c0_31], %55 {strides = array<i32>} : memref<128x256xf32, #tpu.memory_space<vmem>>, vector<32x256xf32>,
    %c2_i32_32 = arith.constant 2 : i32
    %57 = tpu.dynamic_rotate %52 by %c2_i32_32 dim 1 : vector<32x256xf32>, i32 -> vector<32x256xf32>
    %cst_33 = arith.constant 0.000000e+00 : f32
    %58 = vector.broadcast %cst_33 : f32 to vector<32x256xf32>
    %59 = arith.select %22, %57, %58 : vector<32x256xi1>, vector<32x256xf32>
    %c32_34 = arith.constant 32 : index
    %c0_35 = arith.constant 0 : index
    %60 = vector.load %arg5[%c32_34, %c0_35] : memref<128x256xf32, #tpu.memory_space<vmem>>, vector<32x256xf32>
    tpu.vector_store %arg5[%c32_34, %c0_35], %59 {strides = array<i32>} : memref<128x256xf32, #tpu.memory_space<vmem>>, vector<32x256xf32>,
    %c1_i32_36 = arith.constant 1 : i32
    %61 = tpu.dynamic_rotate %52 by %c1_i32_36 dim 1 : vector<32x256xf32>, i32 -> vector<32x256xf32>
    %cst_37 = arith.constant 0.000000e+00 : f32
    %62 = vector.broadcast %cst_37 : f32 to vector<32x256xf32>
    %63 = arith.select %24, %61, %62 : vector<32x256xi1>, vector<32x256xf32>
    %c64_38 = arith.constant 64 : index
    %c0_39 = arith.constant 0 : index
    %64 = vector.load %arg5[%c64_38, %c0_39] : memref<128x256xf32, #tpu.memory_space<vmem>>, vector<32x256xf32>
    tpu.vector_store %arg5[%c64_38, %c0_39], %63 {strides = array<i32>} : memref<128x256xf32, #tpu.memory_space<vmem>>, vector<32x256xf32>,
    %c96_40 = arith.constant 96 : index
    %c0_41 = arith.constant 0 : index
    %65 = vector.load %arg5[%c96_40, %c0_41] : memref<128x256xf32, #tpu.memory_space<vmem>>, vector<32x256xf32>
    tpu.vector_store %arg5[%c96_40, %c0_41], %52 {strides = array<i32>} : memref<128x256xf32, #tpu.memory_space<vmem>>, vector<32x256xf32>,
    %c1 = arith.constant 1 : index
    %c0_42 = arith.constant 0 : index
    %c0_43 = arith.constant 0 : index
    %66 = vector.load %arg2[%c1, %c0_42, %c0_43] : memref<4x32x128xf32, #tpu.memory_space<vmem>>, vector<1x32x128xf32>
    %67 = vector.shape_cast %66 : vector<1x32x128xf32> to vector<32x128xf32>
    %c0_44 = arith.constant 0 : index
    %c0_45 = arith.constant 0 : index
    %68 = vector.load %arg5[%c0_44, %c0_45] : memref<128x256xf32, #tpu.memory_space<vmem>>, vector<128x256xf32>
    %cst_46 = arith.constant dense<0.000000e+00> : vector<32x256xf32>
    %69 = tpu.matmul %67, %68, %cst_46 {dimension_numbers = #tpu.dot_dimension_numbers<[1], [0], [0], [1], [0, 0, 1, 1], [], []>} : vector<32x128xf32>, vector<128x256xf32>, vector<32x256xf32> -> vector<32x256xf32>
    %c1_47 = arith.constant 1 : index
    %c0_48 = arith.constant 0 : index
    %c0_49 = arith.constant 0 : index
    %70 = vector.load %arg3[%c1_47, %c0_48, %c0_49] : memref<4x32x256xf32, #tpu.memory_space<vmem>>, vector<1x32x256xf32>
    %71 = vector.shape_cast %70 : vector<1x32x256xf32> to vector<32x256xf32>
    %72 = arith.addf %69, %71 : vector<32x256xf32>
    %cst_50 = arith.constant 0.000000e+00 : f32
    %73 = vector.broadcast %cst_50 : f32 to vector<32x256xf32>
    %74 = arith.cmpf ogt, %72, %73 : vector<32x256xf32>
    %cst_51 = arith.constant 0.000000e+00 : f32
    %75 = vector.broadcast %cst_51 : f32 to vector<32x256xf32>
    %76 = arith.minimumf %72, %75 : vector<32x256xf32>
    %77 = math.exp %76 : vector<32x256xf32>
    %cst_52 = arith.constant 1.000000e+00 : f32
    %78 = vector.broadcast %cst_52 : f32 to vector<32x256xf32>
    %79 = arith.subf %77, %78 : vector<32x256xf32>
    %80 = arith.select %74, %72, %79 : vector<32x256xi1>, vector<32x256xf32>
    %81 = arith.addf %80, %1 : vector<32x256xf32>
    %cst_53 = arith.constant 0.000000e+00 : f32
    %82 = vector.broadcast %cst_53 : f32 to vector<32x256xf32>
    %83 = arith.cmpf ogt, %81, %82 : vector<32x256xf32>
    %cst_54 = arith.constant 0.000000e+00 : f32
    %84 = vector.broadcast %cst_54 : f32 to vector<32x256xf32>
    %85 = arith.minimumf %81, %84 : vector<32x256xf32>
    %86 = math.exp %85 : vector<32x256xf32>
    %cst_55 = arith.constant 1.000000e+00 : f32
    %87 = vector.broadcast %cst_55 : f32 to vector<32x256xf32>
    %88 = arith.subf %86, %87 : vector<32x256xf32>
    %89 = arith.select %83, %81, %88 : vector<32x256xi1>, vector<32x256xf32>
    %c6_i32 = arith.constant 6 : i32
    %90 = vector.broadcast %c6_i32 : i32 to vector<32x256xi32>
    %91 = arith.cmpi sge, %18, %90 : vector<32x256xi32>
    %c4_i32 = arith.constant 4 : i32
    %92 = vector.broadcast %c4_i32 : i32 to vector<32x256xi32>
    %93 = arith.cmpi sge, %18, %92 : vector<32x256xi32>
    %c2_i32_56 = arith.constant 2 : i32
    %94 = vector.broadcast %c2_i32_56 : i32 to vector<32x256xi32>
    %95 = arith.cmpi sge, %18, %94 : vector<32x256xi32>
    %c6_i32_57 = arith.constant 6 : i32
    %96 = tpu.dynamic_rotate %89 by %c6_i32_57 dim 1 : vector<32x256xf32>, i32 -> vector<32x256xf32>
    %cst_58 = arith.constant 0.000000e+00 : f32
    %97 = vector.broadcast %cst_58 : f32 to vector<32x256xf32>
    %98 = arith.select %91, %96, %97 : vector<32x256xi1>, vector<32x256xf32>
    %c0_59 = arith.constant 0 : index
    %c0_60 = arith.constant 0 : index
    %99 = vector.load %arg5[%c0_59, %c0_60] : memref<128x256xf32, #tpu.memory_space<vmem>>, vector<32x256xf32>
    tpu.vector_store %arg5[%c0_59, %c0_60], %98 {strides = array<i32>} : memref<128x256xf32, #tpu.memory_space<vmem>>, vector<32x256xf32>,
    %c4_i32_61 = arith.constant 4 : i32
    %100 = tpu.dynamic_rotate %89 by %c4_i32_61 dim 1 : vector<32x256xf32>, i32 -> vector<32x256xf32>
    %cst_62 = arith.constant 0.000000e+00 : f32
    %101 = vector.broadcast %cst_62 : f32 to vector<32x256xf32>
    %102 = arith.select %93, %100, %101 : vector<32x256xi1>, vector<32x256xf32>
    %c32_63 = arith.constant 32 : index
    %c0_64 = arith.constant 0 : index
    %103 = vector.load %arg5[%c32_63, %c0_64] : memref<128x256xf32, #tpu.memory_space<vmem>>, vector<32x256xf32>
    tpu.vector_store %arg5[%c32_63, %c0_64], %102 {strides = array<i32>} : memref<128x256xf32, #tpu.memory_space<vmem>>, vector<32x256xf32>,
    %c2_i32_65 = arith.constant 2 : i32
    %104 = tpu.dynamic_rotate %89 by %c2_i32_65 dim 1 : vector<32x256xf32>, i32 -> vector<32x256xf32>
    %cst_66 = arith.constant 0.000000e+00 : f32
    %105 = vector.broadcast %cst_66 : f32 to vector<32x256xf32>
    %106 = arith.select %95, %104, %105 : vector<32x256xi1>, vector<32x256xf32>
    %c64_67 = arith.constant 64 : index
    %c0_68 = arith.constant 0 : index
    %107 = vector.load %arg5[%c64_67, %c0_68] : memref<128x256xf32, #tpu.memory_space<vmem>>, vector<32x256xf32>
    tpu.vector_store %arg5[%c64_67, %c0_68], %106 {strides = array<i32>} : memref<128x256xf32, #tpu.memory_space<vmem>>, vector<32x256xf32>,
    %c96_69 = arith.constant 96 : index
    %c0_70 = arith.constant 0 : index
    %108 = vector.load %arg5[%c96_69, %c0_70] : memref<128x256xf32, #tpu.memory_space<vmem>>, vector<32x256xf32>
    tpu.vector_store %arg5[%c96_69, %c0_70], %89 {strides = array<i32>} : memref<128x256xf32, #tpu.memory_space<vmem>>, vector<32x256xf32>,
    %c2 = arith.constant 2 : index
    %c0_71 = arith.constant 0 : index
    %c0_72 = arith.constant 0 : index
    %109 = vector.load %arg2[%c2, %c0_71, %c0_72] : memref<4x32x128xf32, #tpu.memory_space<vmem>>, vector<1x32x128xf32>
    %110 = vector.shape_cast %109 : vector<1x32x128xf32> to vector<32x128xf32>
    %c0_73 = arith.constant 0 : index
    %c0_74 = arith.constant 0 : index
    %111 = vector.load %arg5[%c0_73, %c0_74] : memref<128x256xf32, #tpu.memory_space<vmem>>, vector<128x256xf32>
    %cst_75 = arith.constant dense<0.000000e+00> : vector<32x256xf32>
    %112 = tpu.matmul %110, %111, %cst_75 {dimension_numbers = #tpu.dot_dimension_numbers<[1], [0], [0], [1], [0, 0, 1, 1], [], []>} : vector<32x128xf32>, vector<128x256xf32>, vector<32x256xf32> -> vector<32x256xf32>
    %c2_76 = arith.constant 2 : index
    %c0_77 = arith.constant 0 : index
    %c0_78 = arith.constant 0 : index
    %113 = vector.load %arg3[%c2_76, %c0_77, %c0_78] : memref<4x32x256xf32, #tpu.memory_space<vmem>>, vector<1x32x256xf32>
    %114 = vector.shape_cast %113 : vector<1x32x256xf32> to vector<32x256xf32>
    %115 = arith.addf %112, %114 : vector<32x256xf32>
    %cst_79 = arith.constant 0.000000e+00 : f32
    %116 = vector.broadcast %cst_79 : f32 to vector<32x256xf32>
    %117 = arith.cmpf ogt, %115, %116 : vector<32x256xf32>
    %cst_80 = arith.constant 0.000000e+00 : f32
    %118 = vector.broadcast %cst_80 : f32 to vector<32x256xf32>
    %119 = arith.minimumf %115, %118 : vector<32x256xf32>
    %120 = math.exp %119 : vector<32x256xf32>
    %cst_81 = arith.constant 1.000000e+00 : f32
    %121 = vector.broadcast %cst_81 : f32 to vector<32x256xf32>
    %122 = arith.subf %120, %121 : vector<32x256xf32>
    %123 = arith.select %117, %115, %122 : vector<32x256xi1>, vector<32x256xf32>
    %c6_i32_82 = arith.constant 6 : i32
    %124 = tpu.dynamic_rotate %123 by %c6_i32_82 dim 1 : vector<32x256xf32>, i32 -> vector<32x256xf32>
    %cst_83 = arith.constant 0.000000e+00 : f32
    %125 = vector.broadcast %cst_83 : f32 to vector<32x256xf32>
    %126 = arith.select %91, %124, %125 : vector<32x256xi1>, vector<32x256xf32>
    %c0_84 = arith.constant 0 : index
    %c0_85 = arith.constant 0 : index
    %127 = vector.load %arg5[%c0_84, %c0_85] : memref<128x256xf32, #tpu.memory_space<vmem>>, vector<32x256xf32>
    tpu.vector_store %arg5[%c0_84, %c0_85], %126 {strides = array<i32>} : memref<128x256xf32, #tpu.memory_space<vmem>>, vector<32x256xf32>,
    %c4_i32_86 = arith.constant 4 : i32
    %128 = tpu.dynamic_rotate %123 by %c4_i32_86 dim 1 : vector<32x256xf32>, i32 -> vector<32x256xf32>
    %cst_87 = arith.constant 0.000000e+00 : f32
    %129 = vector.broadcast %cst_87 : f32 to vector<32x256xf32>
    %130 = arith.select %93, %128, %129 : vector<32x256xi1>, vector<32x256xf32>
    %c32_88 = arith.constant 32 : index
    %c0_89 = arith.constant 0 : index
    %131 = vector.load %arg5[%c32_88, %c0_89] : memref<128x256xf32, #tpu.memory_space<vmem>>, vector<32x256xf32>
    tpu.vector_store %arg5[%c32_88, %c0_89], %130 {strides = array<i32>} : memref<128x256xf32, #tpu.memory_space<vmem>>, vector<32x256xf32>,
    %c2_i32_90 = arith.constant 2 : i32
    %132 = tpu.dynamic_rotate %123 by %c2_i32_90 dim 1 : vector<32x256xf32>, i32 -> vector<32x256xf32>
    %cst_91 = arith.constant 0.000000e+00 : f32
    %133 = vector.broadcast %cst_91 : f32 to vector<32x256xf32>
    %134 = arith.select %95, %132, %133 : vector<32x256xi1>, vector<32x256xf32>
    %c64_92 = arith.constant 64 : index
    %c0_93 = arith.constant 0 : index
    %135 = vector.load %arg5[%c64_92, %c0_93] : memref<128x256xf32, #tpu.memory_space<vmem>>, vector<32x256xf32>
    tpu.vector_store %arg5[%c64_92, %c0_93], %134 {strides = array<i32>} : memref<128x256xf32, #tpu.memory_space<vmem>>, vector<32x256xf32>,
    %c96_94 = arith.constant 96 : index
    %c0_95 = arith.constant 0 : index
    %136 = vector.load %arg5[%c96_94, %c0_95] : memref<128x256xf32, #tpu.memory_space<vmem>>, vector<32x256xf32>
    tpu.vector_store %arg5[%c96_94, %c0_95], %123 {strides = array<i32>} : memref<128x256xf32, #tpu.memory_space<vmem>>, vector<32x256xf32>,
    %c3 = arith.constant 3 : index
    %c0_96 = arith.constant 0 : index
    %c0_97 = arith.constant 0 : index
    %137 = vector.load %arg2[%c3, %c0_96, %c0_97] : memref<4x32x128xf32, #tpu.memory_space<vmem>>, vector<1x32x128xf32>
    %138 = vector.shape_cast %137 : vector<1x32x128xf32> to vector<32x128xf32>
    %c0_98 = arith.constant 0 : index
    %c0_99 = arith.constant 0 : index
    %139 = vector.load %arg5[%c0_98, %c0_99] : memref<128x256xf32, #tpu.memory_space<vmem>>, vector<128x256xf32>
    %cst_100 = arith.constant dense<0.000000e+00> : vector<32x256xf32>
    %140 = tpu.matmul %138, %139, %cst_100 {dimension_numbers = #tpu.dot_dimension_numbers<[1], [0], [0], [1], [0, 0, 1, 1], [], []>} : vector<32x128xf32>, vector<128x256xf32>, vector<32x256xf32> -> vector<32x256xf32>
    %c3_101 = arith.constant 3 : index
    %c0_102 = arith.constant 0 : index
    %c0_103 = arith.constant 0 : index
    %141 = vector.load %arg3[%c3_101, %c0_102, %c0_103] : memref<4x32x256xf32, #tpu.memory_space<vmem>>, vector<1x32x256xf32>
    %142 = vector.shape_cast %141 : vector<1x32x256xf32> to vector<32x256xf32>
    %143 = arith.addf %140, %142 : vector<32x256xf32>
    %cst_104 = arith.constant 0.000000e+00 : f32
    %144 = vector.broadcast %cst_104 : f32 to vector<32x256xf32>
    %145 = arith.cmpf ogt, %143, %144 : vector<32x256xf32>
    %cst_105 = arith.constant 0.000000e+00 : f32
    %146 = vector.broadcast %cst_105 : f32 to vector<32x256xf32>
    %147 = arith.minimumf %143, %146 : vector<32x256xf32>
    %148 = math.exp %147 : vector<32x256xf32>
    %cst_106 = arith.constant 1.000000e+00 : f32
    %149 = vector.broadcast %cst_106 : f32 to vector<32x256xf32>
    %150 = arith.subf %148, %149 : vector<32x256xf32>
    %151 = arith.select %145, %143, %150 : vector<32x256xi1>, vector<32x256xf32>
    %152 = arith.addf %151, %89 : vector<32x256xf32>
    %cst_107 = arith.constant 0.000000e+00 : f32
    %153 = vector.broadcast %cst_107 : f32 to vector<32x256xf32>
    %154 = arith.cmpf ogt, %152, %153 : vector<32x256xf32>
    %cst_108 = arith.constant 0.000000e+00 : f32
    %155 = vector.broadcast %cst_108 : f32 to vector<32x256xf32>
    %156 = arith.minimumf %152, %155 : vector<32x256xf32>
    %157 = math.exp %156 : vector<32x256xf32>
    %cst_109 = arith.constant 1.000000e+00 : f32
    %158 = vector.broadcast %cst_109 : f32 to vector<32x256xf32>
    %159 = arith.subf %157, %158 : vector<32x256xf32>
    %160 = arith.select %154, %152, %159 : vector<32x256xi1>, vector<32x256xf32>
    %c0_110 = arith.constant 0 : index
    %c0_111 = arith.constant 0 : index
    %c0_112 = arith.constant 0 : index
    %161 = vector.load %arg4[%c0_110, %c0_111, %c0_112] : memref<1x32x256xf32, #tpu.memory_space<vmem>>, vector<1x32x256xf32>
    %162 = vector.shape_cast %161 : vector<1x32x256xf32> to vector<32x256xf32>
    %163 = vector.shape_cast %160 : vector<32x256xf32> to vector<1x32x256xf32>
    tpu.vector_store %arg4[%c0_110, %c0_111, %c0_112], %163 {strides = array<i32>} : memref<1x32x256xf32, #tpu.memory_space<vmem>>, vector<1x32x256xf32>,
    return
  }
  func.func @transform_0(%arg0: i32) -> (i32, i32, i32) {
    %c0_i32 = arith.constant 0 : i32
    %c0_i32_0 = arith.constant 0 : i32
    %c0_i32_1 = arith.constant 0 : i32
    return %arg0, %c0_i32, %c0_i32_0 : i32, i32, i32
  }
  func.func @transform_1(%arg0: i32) -> (i32, i32, i32) {
    %c0_i32 = arith.constant 0 : i32
    %c0_i32_0 = arith.constant 0 : i32
    %c0_i32_1 = arith.constant 0 : i32
    %c0_i32_2 = arith.constant 0 : i32
    return %c0_i32, %c0_i32_0, %c0_i32_1 : i32, i32, i32
  }
  func.func @transform_2(%arg0: i32) -> (i32, i32, i32) {
    %c0_i32 = arith.constant 0 : i32
    %c0_i32_0 = arith.constant 0 : i32
    %c0_i32_1 = arith.constant 0 : i32
    %c0_i32_2 = arith.constant 0 : i32
    return %c0_i32, %c0_i32_0, %c0_i32_1 : i32, i32, i32
  }
  func.func @transform_3(%arg0: i32) -> (i32, i32, i32) {
    %c0_i32 = arith.constant 0 : i32
    %c0_i32_0 = arith.constant 0 : i32
    %c0_i32_1 = arith.constant 0 : i32
    return %arg0, %c0_i32, %c0_i32_0 : i32, i32, i32
  }
}

</mosaic_0001>

<bundles_post_ra>
// kernel: tpu_custom_call.1
= control target key start
LH: loop header
LB: loop body
LE: loop exit
PB: predicated region body
PF: predicated region fallthrough
CT: control target
= control target key end

     0   :  { %8 = vsyncpa [#allocation4], 0  ;;  %s3548_s0 = inlined_call_operand.hbm [shape: f32[2,32,256], index: 0, kind: input, shape index: {}]   ;;  %s3549_s1 = inlined_call_operand.hbm [shape: f32[4,32,128], index: 1, kind: input, shape index: {}]   ;;  %s3550_s2 = inlined_call_operand.hbm [shape: f32[4,32,256], index: 2, kind: input, shape index: {}]   ;;  %s3551_s3 = inlined_call_operand.hbm [shape: f32[2,32,256], index: 3, kind: output, shape index: {}]  }
   0x1   :  { %10 = vsyncpa [#allocation4 + $0x1], 0 }
   0x2   :  { %11 = vsyncpa [#allocation7], 0 }
   0x3   :  { %12 = vsyncpa [#allocation5], 0 }
   0x4   :  { %14 = vsyncpa [#allocation5 + $0x1], 0  ;;  %s2685_s12 = smov 0   ;;  %s2687_s13 = smov 0  }
   0x5   :  { %s2689_s14 = smov 0   ;;  %s2691_s15 = smov 0  }
   0x6 LB: > { %s2706_s16 = sadd.s32 4294967295, %s2647_s15   ;;  %s1736_s17 = sadd.s32 4294967294, %s2647_s15   ;;  %s2647_s15 = sphi %s2691_s15, %s3591_s15   ;;  %s2643_s14 = sphi %s2689_s14, %s3590_s14   ;;  %s2639_s13 = sphi %s2687_s13, %s3589_s13   ;;  %s2635_s12 = sphi %s2685_s12, %s3588_s12  }
   0x7   : > { %p40_p0 = scmp.ne.s32.totalorder %s2639_s13, %s2635_s12  ;;  %p3552_p1 = scmp.eq.s32.totalorder %s2706_s16, 0 }
   0x8   : > { %p112_p3 = scmp.eq.s32.totalorder %s1736_s17, 1  ;;  %p1737_p5 = scmp.ge.s32.totalorder %s2647_s15, 1 }
   0x9   : > { %p2715_p4 = por %p3552_p1, %p40_p0  ;;  %p119_p7 = scmp.lt.s32.totalorder %s2647_s15, 3 }
   0xa   : > { %p2720_p6 = por %p112_p3, %p40_p0  ;;  %s2649_s21 = smov [#allocation6]  }
   0xb   : > { %s3555_s18 = scalar_select %p2715_p4, 1, 0 }
   0xc   : > { %s3556_s19 = scalar_select %p2720_p6, 1, 0 }
   0xd   : > { %p2725_p8 = pnand %p1737_p5, %p119_p7  ;;  %s131_s22 = sshll.u32 %s2649_s21, 4  ;;  %s2729_s22 = int_to_ptr.vmem [resolvable:$true] %s131_s22 }
   0xe   : > { %s2650_s24 = smov [#allocation8]   ;;  %s2491_s28 = scalar_lea.hbm %s3549_s1, 2048 }
   0xf   : > { %p2088_p9 = pneg %p2725_p8  ;;  %s144_s25 = sshll.u32 %s2650_s24, 4  ;;  %s2740_s25 = int_to_ptr.vmem [resolvable:$true] %s144_s25 }
  0x10   : > { %p2492_p12 = scmp.ne.s32.totalorder %s3549_s1, %s2491_s28  ;;  %p2498_p5 = scmp.lt.u32.totalorder %s2491_s28, %s3549_s1 }
  0x11   : > { %p2736_p11 = pnand %p2088_p9, %p3552_p1 }
  0x13   : > { %p2493_p13 = pneg %p2736_p11 }
  0x15   : > { %p2494_p0 = pnand %p2493_p13, %p2492_p12 }
  0x17   : > { %p2495_p3 = pneg %p2494_p0 }
  0x19   : > { %p2500_p7 = pnand %p2498_p5, %p2495_p3 }
  0x1b   : > { %2503 = shalt.err (!%p2500_p7)
}
  0x1c   : > { %s2504_s6 = scalar_lea.vmem %s2729_s22, 2048  ;;  %p2512_p2 = scmp.lt.s32.totalorder %s2729_s22, %s2729_s22 }
  0x1d   : > { %p2505_p9 = scmp.ne.s32.totalorder %s2729_s22, %s2504_s6  ;;  %p2513_p12 = scmp.lt.s32.totalorder %s2504_s6, %s2504_s6 }
  0x1f   : > { %p2507_p10 = pnand %p2505_p9, %p2493_p13  ;;  %p2514_p0 = por %p2513_p12, %p2512_p2 }
  0x21   : > { %p2508_p1 = pneg %p2507_p10 }
  0x23   : > { %p2515_p6 = pnand %p2514_p0, %p2508_p1 }
  0x25   : > { %2518 = shalt.err (!%p2515_p6)
}
  0x26   : > { %s2651_s7 = smov 128   ;;  %s2652_s8 = smov 8  }
  0x27   : > { %2091 = dma.hbm_to_vmem [thread:$0]  (!%p2736_p11), %s3549_s1, 2048, %s2729_s22, [#allocation7], %s2651_s7, %s2651_s7, %s2652_s8  }
  0x28   : > { %s2519_s21 = scalar_lea.hbm %s3550_s2, 4096 }
  0x29   : > { %p2520_p2 = scmp.ne.s32.totalorder %s3550_s2, %s2519_s21  ;;  %p2526_p10 = scmp.lt.u32.totalorder %s2519_s21, %s3550_s2 }
  0x2b   : > { %p2522_p1 = pnand %p2520_p2, %p2493_p13 }
  0x2d   : > { %p2523_p6 = pneg %p2522_p1 }
  0x2f   : > { %p2528_p3 = pnand %p2526_p10, %p2523_p6 }
  0x31   : > { %2531 = shalt.err (!%p2528_p3)
}
  0x32   : > { %s2532_s22 = scalar_lea.vmem %s2740_s25, 4096  ;;  %p2540_p12 = scmp.lt.s32.totalorder %s2740_s25, %s2740_s25 }
  0x33   : > { %p2533_p5 = scmp.ne.s32.totalorder %s2740_s25, %s2532_s22  ;;  %p2541_p0 = scmp.lt.s32.totalorder %s2532_s22, %s2532_s22 }
  0x35   : > { %p2535_p7 = pnand %p2533_p5, %p2493_p13  ;;  %p2542_p2 = por %p2541_p0, %p2540_p12 }
  0x37   : > { %p2536_p9 = pneg %p2535_p7 }
  0x39   : > { %p2543_p1 = pnand %p2542_p2, %p2536_p9 }
  0x3b   : > { %2546 = shalt.err (!%p2543_p1)
}
  0x3c   : > { %s2653_s29 = smov 256   ;;  %s2654_s30 = smov 16  }
  0x3d   : > { %2094 = dma.hbm_to_vmem [thread:$0]  (!%p2736_p11), %s3550_s2, 4096, %s2740_s25, [#allocation7], %s2653_s29, %s2653_s29, %s2654_s30  }
  0x3e   : > { %s2798_s6 = sadd.s32 1, %s2647_s15   ;;  %s27_s8 = sadd.s32 1, %s2643_s14 }
  0x3f   : > { %s24_s7 = ssub.s32 %s2647_s15, %s2798_s6  ;;  %p34_p6 = scmp.ne.s32.totalorder %s2643_s14, %s2639_s13 }
  0x40   : > { %p25_p13 = scmp.eq.s32.totalorder %s24_s7, 0  ;;  %p35_p10 = scmp.eq.s32.totalorder %s2647_s15, 0 }
  0x41   : > { %p3559_p5 = scmp.eq.s32.totalorder %s2706_s16, 1  ;;  %p2105_p9 = scmp.lt.s32.totalorder %s2647_s15, 2 }
  0x42   : > { %s2807_s9 = scalar_select %p25_p13, %s2643_s14, %s27_s8  }
  0x43   : > { %p36_p3 = por %p35_p10, %p34_p6  ;;  %p2811_p7 = por %p3559_p5, %p34_p6 }
  0x44   : > { %s158_s10 = sand.u32 1, %s2643_s14   ;;  %s1802_s25 = sshll.u32 %s2647_s15, 10 }
  0x45   : > { %s3560_s23 = scalar_select %p2811_p7, 1, 0 }
  0x46   : > { %s1741_s11 = sshll.u32 %s158_s10, 6  ;;  %s2821_s24 = scalar_lea.hbm %s3548_s0, %s1802_s25 }
  0x47   : > { %s162_s26 = scalar_lea.vmem [#allocation3], %s1741_s11  ;;  %p2825_p11 = pnand %p2105_p9, %p36_p3 }
  0x48   : > { %s169_s27 = sshll.u32 %s162_s26, 4  ;;  %s2829_s22 = scalar_lea.sflag [#allocation4], %s158_s10  ;;  %s2823_s27 = int_to_ptr.vmem [resolvable:$true] %s169_s27 }
  0x49   : > { %s2547_s4 = scalar_lea.hbm %s2821_s24, 1024  ;;  %p2549_p0 = pneg %p2825_p11 }
  0x4a   : > { %p2548_p12 = scmp.ne.s32.totalorder %s2821_s24, %s2547_s4  ;;  %s2552_s8 = scalar_lea.hbm %s3548_s0, 2048 }
  0x4b   : > { %p2553_p13 = scmp.lt.u32.totalorder %s2821_s24, %s3548_s0  ;;  %p2554_p6 = scmp.lt.u32.totalorder %s2552_s8, %s2547_s4 }
  0x4c   : > { %p2550_p2 = pnand %p2549_p0, %p2548_p12  ;;  %p2556_p3 = scmp.lt.u32.totalorder %s2547_s4, %s2821_s24 }
  0x4d   : > { %p2555_p10 = por %p2554_p6, %p2553_p13 }
  0x4e   : > { %p2551_p1 = pneg %p2550_p2 }
  0x4f   : > { %p2557_p5 = por %p2556_p3, %p2555_p10 }
  0x51   : > { %p2558_p9 = pnand %p2557_p5, %p2551_p1 }
  0x53   : > { %2561 = shalt.err (!%p2558_p9)
}
  0x54   : > { %s2562_s10 = scalar_lea.vmem %s2823_s27, 1024  ;;  %s2655_s17 = smov [#allocation3]  }
  0x55   : > { %p2563_p12 = scmp.ne.s32.totalorder %s2823_s27, %s2562_s10  ;;  %s2567_s21 = sshll.u32 %s2655_s17, 4  ;;  %s2568_s21 = int_to_ptr.vmem [resolvable:$false] %s2567_s21 }
  0x56   : > { %s2569_s26 = scalar_lea.vmem %s2568_s21, 2048  ;;  %p2570_p4 = scmp.lt.s32.totalorder %s2823_s27, %s2568_s21 }
  0x57   : > { %p2565_p2 = pnand %p2563_p12, %p2549_p0  ;;  %p2571_p13 = scmp.lt.s32.totalorder %s2569_s26, %s2562_s10 }
  0x59   : > { %p2566_p7 = pneg %p2565_p2  ;;  %p2572_p6 = por %p2571_p13, %p2570_p4 }
  0x5b   : > { %p2573_p10 = pnand %p2572_p6, %p2566_p7 }
  0x5d   : > { %2576 = shalt.err (!%p2573_p10)
}
  0x5e   : > { %2098 = dma.hbm_to_vmem [thread:$0]  (!%p2825_p11), %s2821_s24, 1024, %s2823_s27, %s2829_s22, %s2653_s29, %s2653_s29, %s2654_s30  }
  0x5f   : > { %181 = sbr.rel (%p2725_p8) target bundleno = 1751 (0x6d7), region = 32  ;;  %s2863_s4 = sand.u32 (!%p2725_p8), 1, %s2639_s13  }
  0x60   : > { %s1745_s5 = sshll.u32 (!%p2725_p8), %s2863_s4, 6  ;;  %s184_s7 = scalar_lea.sflag (!%p2725_p8), [#allocation4], %s2863_s4 }
  0x61   : > { %s187_s28 = scalar_lea.vmem (!%p2725_p8), [#allocation3], %s1745_s5  ;;  %p3562_p4 = scmp.ne.s32.totalorder (!%p2725_p8), %s3555_s18, 0 }
  0x66   : > { %2622 = dma.done.wait (%p3562_p4), %s184_s7, 1024  }
  0x67   : > { %2624 = vsyncadd (%p3562_p4), %s184_s7, 4294966272  ;;  %p3563_p7 = scmp.eq.s32.totalorder %s2706_s16, 0 }
  0x69   : > { %2626 = dma.done.wait (%p3563_p7), [#allocation7], 6144   ;;  %p3564_p8 = pmov %p3563_p7 }
  0x6a   : > { %v2877_v0 = vld [vmem:[%s187_s28 + $0x20] sm:$0xff]  ;;  %v2879_v1 = vld [vmem:[%s187_s28 + $0x30] sm:$0xff]  ;;  %v2887_v5 = vld [vmem:[%s187_s28 + $0x28] sm:$0xff]  ;;  %s2656_s18 = smov 3   ;;  %s2657_s20 = smov 2   ;;  %v2659_v12 = vmov 0.0   ;;  %v226_v13 = vlaneseq }
  0x6b   : > { %2628 = vsyncadd (%p3564_p8), [#allocation7], 4294961152  ;;  %v2881_v2 = vld [vmem:[%s187_s28] sm:$0xff]  ;;  %v2165_v3 = vpack.i.bf16 %v2879_v1, %v2877_v0  ;;  %v2885_v4 = vld [vmem:[%s187_s28 + $0x10] sm:$0xff]  ;;  %s2658_s29 = smov 1   ;;  %498 = vmatprep.mubr.f32.mxu0 %v2659_v12  ;;  %809 = vmatprep.mubr.f32.mxu1 %v2659_v12  ;;  %s2660_s30 = smov 6  }
  0x6c   : > { %v2889_v6 = vld [vmem:[%s187_s28 + $0x38] sm:$0xff]  ;;  %v2155_v7 = vpack.i.bf16 %v2885_v4, %v2881_v2  ;;  %v2893_v8 = vld [vmem:[%s187_s28 + $0x8] sm:$0xff]  ;;  %v2915_v14 = vand.u32 127, %v226_v13  ;;  %s2661_s24 = smov 4   ;;  %v1386_v13 = vld [vmem:[#allocation6 + $0x70] sm:$0xff]  ;;  %s3486_s27 = scalar_lea.vmem [#allocation9], %s1745_s5 }
  0x6d   : > { %v2895_v9 = vld [vmem:[%s187_s28 + $0x18] sm:$0xff]  ;;  %2166 = vrot.lane.b32.xlu1 %v2165_v3, %s2656_s18  ;;  %v2170_v10 = vpack.i.bf16 %v2889_v6, %v2887_v5  ;;  %v1385_v60 = vld [vmem:[#allocation6 + $0x68] sm:$0xff]  ;;  %s1803_s22 = sshll.u32 %s2706_s16, 10  ;;  %s1644_s8 = sshll.u32 %s3486_s27, 4  ;;  %s3502_s8 = int_to_ptr.vmem [resolvable:$true] %s1644_s8 }
  0x6e   : > { %2156 = vrot.lane.b32.xlu0 %v2155_v7, %s2656_s18  ;;  %v2160_v11 = vpack.i.bf16 %v2895_v9, %v2893_v8  ;;  %v228_v15 = vadd.s32 128, %v2915_v14  ;;  %vm275_vm0 = vcmp.lt.s32.totalorder %v2915_v14, 3  ;;  %vm253_vm2 = vcmp.ge.s32.totalorder %v2915_v14, 3  ;;  %s3500_s10 = scalar_lea.hbm %s3551_s3, %s1803_s22  ;;  %s1631_s16 = scalar_lea.sflag [#allocation5], %s2863_s4 }
  0x6f   : > { %vm316_vm3 = vcmp.lt.s32.totalorder %v2915_v14, 2  ;;  %vm2940_vm5 = vmpackc.low %vm253_vm2, %vm253_vm2  ;;  %vm255_vm8 = vcmp.ge.s32.totalorder %v2915_v14, 2  ;;  %vm357_vm9 = vcmp.lt.s32.totalorder %v2915_v14, 1  ;;  %vm257_vm13 = vcmp.ge.s32.totalorder %v2915_v14, 1  ;;  %s2577_s17 = scalar_lea.vmem %s3502_s8, 1024  ;;  %p3585_p0 = scmp.ne.s32.totalorder %s3560_s23, 0 }
  0x70   : > { %v2918_v18 = vand.u32 127, %v228_v15  ;;  %vm2981_vm10 = vmpackc.low %vm255_vm8, %vm255_vm8  ;;  %p2578_p11 = scmp.ne.s32.totalorder %s3502_s8, %s2577_s17  ;;  %s2662_s21 = smov [#allocation9]  }
  0x71   : > { %2171 = vrot.lane.b32.xlu1 %v2170_v10, %s2656_s18  ;;  %vm3015_vm14 = vmpackc.low %vm257_vm13, %vm257_vm13  ;;  %s2581_s26 = sshll.u32 %s2662_s21, 4  ;;  %s2582_s26 = int_to_ptr.vmem [resolvable:$false] %s2581_s26 }
  0x72   : > { %2161 = vrot.lane.b32.xlu0 %v2160_v11, %s2656_s18  ;;  %vm254_vm1 = vcmp.ge.s32.totalorder %v2918_v18, 3  ;;  %vm256_vm6 = vcmp.ge.s32.totalorder %v2918_v18, 2  ;;  %vm258_vm11 = vcmp.ge.s32.totalorder %v2918_v18, 1  ;;  %p2579_p1 = pnand %p2578_p11, %p3585_p0  ;;  %s2583_s5 = scalar_lea.vmem %s2582_s26, 2048 }
  0x73   : > { %vm2932_vm4 = vmpackc.low %vm254_vm1, %vm254_vm1  ;;  %p2584_p5 = scmp.lt.s32.totalorder %s3502_s8, %s2582_s26  ;;  %p2585_p9 = scmp.lt.s32.totalorder %s2583_s5, %s2577_s17 }
  0x74   : > { %vm2963_vm7 = vmpackc.low %vm256_vm6, %vm256_vm6  ;;  %p2580_p3 = pneg %p2579_p1 }
  0x75   : > { %2181 = vrot.lane.b32.xlu1 %v2160_v11, %s2657_s20  ;;  %vm2998_vm12 = vmpackc.low %vm258_vm11, %vm258_vm11  ;;  %p2586_p12 = por %p2585_p9, %p2584_p5 }
  0x76   : > { %2176 = vrot.lane.b32.xlu0 %v2155_v7, %s2657_s20 }
  0x77   : > { %p2587_p2 = pnand %p2586_p12, %p2580_p3 }
  0x79   : > { %2191 = vrot.lane.b32.xlu1 %v2170_v10, %s2657_s20 }
  0x7a   : > { %2186 = vrot.lane.b32.xlu0 %v2165_v3, %s2657_s20 }
  0x7d   : > { %2201 = vrot.lane.b32.xlu1 %v2160_v11, %s2658_s29 }
  0x7e   : > { %2196 = vrot.lane.b32.xlu0 %v2155_v7, %s2658_s29 }
  0x81   : > { %2211 = vrot.lane.b32.xlu1 %v2170_v10, %s2658_s29 }
  0x82   : > { %2206 = vrot.lane.b32.xlu0 %v2165_v3, %s2658_s29 }
  0xdf   : > { %v2167_v16 = vpop.permute.xlu1 %2166 }
  0xe0   : > { %v2157_v17 = vpop.permute.xlu0 %2156  ;;  %v2169_v19 = vunpack.i.h.bf16 %v2167_v16  ;;  %v2168_v20 = vunpack.i.l.bf16 %v2167_v16 }
  0xe1   : > { %v2159_v25 = vunpack.i.h.bf16 %v2157_v17  ;;  %v2158_v26 = vunpack.i.l.bf16 %v2157_v17 }
  0xe3   : > { %v2172_v21 = vpop.permute.xlu1 %2171 }
  0xe4   : > { %v2174_v22 = vunpack.i.h.bf16 %v2172_v21  ;;  %v2173_v23 = vunpack.i.l.bf16 %v2172_v21  ;;  %v2162_v24 = vpop.permute.xlu0 %2161 }
  0xe5   : > { %v2164_v27 = vunpack.i.h.bf16 %v2162_v24  ;;  %v2163_v28 = vunpack.i.l.bf16 %v2162_v24 }
  0xe6   : > { %v278_v29 = vsel %vm275_vm0, %v2168_v20, %v2173_v23  ;;  %v279_v30 = vsel %vm275_vm0, %v2169_v19, %v2174_v22  ;;  %v282_v45 = vsel %vm275_vm0, %v2173_v23, %v2168_v20  ;;  %v283_v46 = vsel %vm275_vm0, %v2174_v22, %v2169_v19 }
  0xe7   : > { %v276_v31 = vsel %vm275_vm0, %v2158_v26, %v2163_v28  ;;  %v277_v32 = vsel %vm275_vm0, %v2159_v25, %v2164_v27  ;;  %v2182_v34 = vpop.permute.xlu1 %2181  ;;  %v280_v36 = vsel %vm275_vm0, %v2163_v28, %v2158_v26  ;;  %v281_v37 = vsel %vm275_vm0, %v2164_v27, %v2159_v25 }
  0xe8   : > { %v1900_v35 = vpack.c.bf16 %v277_v32, %v276_v31  ;;  %v2184_v39 = vunpack.i.h.bf16 %v2182_v34  ;;  %v2177_v40 = vpop.permute.xlu0 %2176  ;;  %v1903_v41 = vpack.c.bf16 %v281_v37, %v280_v36  ;;  %v2183_v42 = vunpack.i.l.bf16 %v2182_v34  ;;  %v700_v34 = vld [vmem:[#allocation6 + $0x20] sm:$0xff] }
  0xe9   : > { %v2179_v43 = vunpack.i.h.bf16 %v2177_v40  ;;  %v2178_v44 = vunpack.i.l.bf16 %v2177_v40  ;;  %v1906_v47 = vpack.c.bf16 %v279_v30, %v278_v29  ;;  %v1909_v57 = vpack.c.bf16 %v283_v46, %v282_v45 }
  0xea   : > { %1902 = vmatprep.subr.msk.bf16.mxu0 %vm2932_vm4, %v1900_v35  ;;  %v1938_v45 = vpack.c.bf16 %v2885_v4, %v2881_v2  ;;  %v1940_v46 = vpack.c.bf16 %v2889_v6, %v2887_v5 }
  0xeb   : > { %1905 = vmatpush1.bf16.msk.msra.mxu0 %vm2940_vm5, %v1903_v41  ;;  %v318_v48 = vsel %vm316_vm3, %v2179_v43, %v2184_v39  ;;  %v322_v49 = vsel %vm316_vm3, %v2184_v39, %v2179_v43  ;;  %v317_v50 = vsel %vm316_vm3, %v2178_v44, %v2183_v42  ;;  %v2192_v51 = vpop.permute.xlu1 %2191  ;;  %v321_v52 = vsel %vm316_vm3, %v2183_v42, %v2178_v44  ;;  %v701_v42 = vld [vmem:[#allocation6 + $0x28] sm:$0xff] }
  0xec   : > { %v1912_v53 = vpack.c.bf16 %v318_v48, %v317_v50  ;;  %1908 = vmatprep.subr.msk.bf16.mxu0 %vm2932_vm4, %v1906_v47  ;;  %v2194_v54 = vunpack.i.h.bf16 %v2192_v51  ;;  %v2193_v55 = vunpack.i.l.bf16 %v2192_v51  ;;  %v2187_v56 = vpop.permute.xlu0 %2186  ;;  %v1915_v61 = vpack.c.bf16 %v322_v49, %v321_v52  ;;  %v390_v48 = vld [vmem:[#allocation6] sm:$0xff]  ;;  %v391_v49 = vld [vmem:[#allocation6 + $0x8] sm:$0xff]  ;;  %v392_v50 = vld [vmem:[#allocation6 + $0x10] sm:$0xff] }
  0xed   : > { %v2189_v58 = vunpack.i.h.bf16 %v2187_v56  ;;  %v2188_v59 = vunpack.i.l.bf16 %v2187_v56  ;;  %v1936_v44 = vpack.c.bf16 %v2895_v9, %v2893_v8  ;;  %v1942_v47 = vpack.c.bf16 %v2879_v1, %v2877_v0  ;;  %v393_v51 = vld [vmem:[#allocation6 + $0x18] sm:$0xff]  ;;  %v426_v52 = vld [vmem:[#allocation8] sm:$0xff] }
  0xef   : > { %1911 = vmatpush1.bf16.msk.msra.mxu0 %vm2940_vm5, %v1909_v57  ;;  %v320_v62 = vsel %vm316_vm3, %v2189_v58, %v2194_v54  ;;  %v324_v63 = vsel %vm316_vm3, %v2194_v54, %v2189_v58  ;;  %v319_v3 = vsel %vm316_vm3, %v2188_v59, %v2193_v55  ;;  %v2202_v7 = vpop.permute.xlu1 %2201  ;;  %v323_v10 = vsel %vm316_vm3, %v2193_v55, %v2188_v59  ;;  %v428_v58 = vld [vmem:[#allocation8 + $0x10] sm:$0xff] }
  0xf0   : > { %v1918_v11 = vpack.c.bf16 %v320_v62, %v319_v3  ;;  %1914 = vmatprep.subr.msk.bf16.mxu0 %vm2963_vm7, %v1912_v53  ;;  %v2204_v15 = vunpack.i.h.bf16 %v2202_v7  ;;  %v2203_v16 = vunpack.i.l.bf16 %v2202_v7  ;;  %v2197_v17 = vpop.permute.xlu0 %2196  ;;  %v1921_v21 = vpack.c.bf16 %v324_v63, %v323_v10  ;;  %v427_v53 = vld [vmem:[#allocation8 + $0x8] sm:$0xff] }
  0xf1   : > { %v2199_v19 = vunpack.i.h.bf16 %v2197_v17  ;;  %v2198_v20 = vunpack.i.l.bf16 %v2197_v17 }
  0xf3   : > { %1917 = vmatpush1.bf16.msk.msra.mxu0 %vm2981_vm10, %v1915_v61  ;;  %v359_v22 = vsel %vm357_vm9, %v2199_v19, %v2204_v15  ;;  %v363_v23 = vsel %vm357_vm9, %v2204_v15, %v2199_v19  ;;  %v358_v24 = vsel %vm357_vm9, %v2198_v20, %v2203_v16  ;;  %v2212_v25 = vpop.permute.xlu1 %2211  ;;  %v362_v26 = vsel %vm357_vm9, %v2203_v16, %v2198_v20  ;;  %v429_v61 = vld [vmem:[#allocation8 + $0x18] sm:$0xff]  ;;  %v430_v16 = vld [vmem:[#allocation8 + $0x20] sm:$0xff]  ;;  %v431_v19 = vld [vmem:[#allocation8 + $0x28] sm:$0xff] }
  0xf4   : > { %v1924_v27 = vpack.c.bf16 %v359_v22, %v358_v24  ;;  %1920 = vmatprep.subr.msk.bf16.mxu0 %vm2963_vm7, %v1918_v11  ;;  %v2214_v28 = vunpack.i.h.bf16 %v2212_v25  ;;  %v2213_v29 = vunpack.i.l.bf16 %v2212_v25  ;;  %v2207_v30 = vpop.permute.xlu0 %2206  ;;  %v1927_v35 = vpack.c.bf16 %v363_v23, %v362_v26 }
  0xf5   : > { %v2209_v31 = vunpack.i.h.bf16 %v2207_v30  ;;  %v2208_v32 = vunpack.i.l.bf16 %v2207_v30 }
  0xf7   : > { %1923 = vmatpush1.bf16.msk.msra.mxu0 %vm2981_vm10, %v1921_v21  ;;  %v361_v36 = vsel %vm357_vm9, %v2209_v31, %v2214_v28  ;;  %v360_v37 = vsel %vm357_vm9, %v2208_v32, %v2213_v29  ;;  %v365_v39 = vsel %vm357_vm9, %v2214_v28, %v2209_v31  ;;  %v364_v40 = vsel %vm357_vm9, %v2213_v29, %v2208_v32  ;;  %v433_v29 = vld [vmem:[#allocation8 + $0x38] sm:$0xff] }
  0xf8   : > { %v1930_v41 = vpack.c.bf16 %v361_v36, %v360_v37  ;;  %1926 = vmatprep.subr.msk.bf16.mxu0 %vm2998_vm12, %v1924_v27  ;;  %v1933_v43 = vpack.c.bf16 %v365_v39, %v364_v40  ;;  %v432_v27 = vld [vmem:[#allocation8 + $0x30] sm:$0xff] }
  0xfb   : > { %1929 = vmatpush1.bf16.msk.msra.mxu0 %vm3015_vm14, %v1927_v35 }
  0xfc   : > { %1932 = vmatprep.subr.msk.bf16.mxu0 %vm2998_vm12, %v1930_v41 }
  0xff   : > { %1935 = vmatpush1.bf16.msk.msra.mxu0 %vm3015_vm14, %v1933_v43 }
 0x100   : > { %1937 = vmatprep.subr.bf16.mxu0 %v1936_v44 }
 0x103   : > { %1939 = vmatpush1.bf16.msra.mxu0 %v1938_v45 }
 0x104   : > { %1941 = vmatprep.subr.bf16.mxu0 %v1940_v46 }
 0x107   : > { %1943 = vmatpush1.bf16.msra.mxu0 %v1942_v47 }
 0x10a   : > { %499 = vmatmul.mubr.f32.vlgmr.msra.gmra.mrb[0].mxu0 %v390_v48 }
 0x10b   : > { %504 = vmatprep.mubr.f32.mxu0 %v2659_v12 }
 0x10e   : > { %505 = vmatmul.mubr.f32.gmra.mrb[2].mxu0 %v391_v49 }
 0x10f   : > { %510 = vmatprep.mubr.f32.mxu0 %v2659_v12 }
 0x112   : > { %511 = vmatmul.mubr.f32.gmra.mrb[4].mxu0 %v392_v50 }
 0x113   : > { %516 = vmatprep.mubr.f32.mxu0 %v2659_v12 }
 0x116   : > { %517 = vmatmul.mubr.f32.gmra.mrb[6].mxu0 %v393_v51 }
 0x117   : > { %1182 = vmatprep.mubr.f32.mxu0 %v2659_v12 }
 0x1dd   : > { %v500_v54 = vpop.f32.mrb[0].mxu0 }
 0x1de   : > { %v501_v55 = vadd.f32 %v500_v54, %v426_v52  ;;  %v502_v56 = vpop.f32.mrb[1].mxu0 }
 0x1df   : > { %v503_v57 = vadd.f32 %v502_v56, %v427_v53 }
 0x1e0   : > { %v531_v59 = vmin.f32 %v501_v55, 0.0  ;;  %vm523_vm15 = vcmp.gt.f32.partialorder %v501_v55, 0.0 }
 0x1e1   : > { %v532_v62 = vmin.f32 %v503_v57, 0.0  ;;  %v506_v63 = vpop.f32.mrb[2].mxu0  ;;  %vm524_vm1 = vcmp.gt.f32.partialorder %v503_v57, 0.0 }
 0x1e2   : > { %v539_v3 = vmul.f32 1.442695, %v531_v59  ;;  %v507_v7 = vadd.f32 %v506_v63, %v428_v58  ;;  %v508_v10 = vpop.f32.mrb[3].mxu0 }
 0x1e3   : > { %v541_v11 = vmul.f32 1.442695, %v532_v62  ;;  %v509_v15 = vadd.f32 %v508_v10, %v429_v61 }
 0x1e4   : > { %2395 = vpow2.f32 %v539_v3  ;;  %v533_v17 = vmin.f32 %v507_v7, 0.0  ;;  %vm525_vm2 = vcmp.gt.f32.partialorder %v507_v7, 0.0 }
 0x1e5   : > { %2397 = vpow2.f32 %v541_v11  ;;  %v534_v20 = vmin.f32 %v509_v15, 0.0  ;;  %v512_v21 = vpop.f32.mrb[4].mxu0  ;;  %vm526_vm6 = vcmp.gt.f32.partialorder %v509_v15, 0.0 }
 0x1e6   : > { %v543_v22 = vmul.f32 1.442695, %v533_v17  ;;  %v513_v23 = vadd.f32 %v512_v21, %v430_v16  ;;  %v514_v24 = vpop.f32.mrb[5].mxu0 }
 0x1e7   : > { %v545_v25 = vmul.f32 1.442695, %v534_v20  ;;  %v515_v26 = vadd.f32 %v514_v24, %v431_v19 }
 0x1e8   : > { %2399 = vpow2.f32 %v543_v22  ;;  %v535_v28 = vmin.f32 %v513_v23, 0.0  ;;  %vm527_vm8 = vcmp.gt.f32.partialorder %v513_v23, 0.0 }
 0x1e9   : > { %2401 = vpow2.f32 %v545_v25  ;;  %v536_v30 = vmin.f32 %v515_v26, 0.0  ;;  %v518_v31 = vpop.f32.mrb[6].mxu0  ;;  %vm528_vm11 = vcmp.gt.f32.partialorder %v515_v26, 0.0 }
 0x1ea   : > { %v547_v32 = vmul.f32 1.442695, %v535_v28  ;;  %v519_v35 = vadd.f32 %v518_v31, %v432_v27  ;;  %v520_v36 = vpop.f32.mrb[7].mxu0 }
 0x1eb   : > { %v549_v37 = vmul.f32 1.442695, %v536_v30  ;;  %v521_v39 = vadd.f32 %v520_v36, %v433_v29 }
 0x1ec   : > { %2403 = vpow2.f32 %v547_v32  ;;  %v537_v40 = vmin.f32 %v519_v35, 0.0  ;;  %vm529_vm13 = vcmp.gt.f32.partialorder %v519_v35, 0.0 }
 0x1ed   : > { %2405 = vpow2.f32 %v549_v37  ;;  %v538_v41 = vmin.f32 %v521_v39, 0.0 }
 0x1ee   : > { %v2396_v43 = vpop.eup %2395  ;;  %v551_v44 = vmul.f32 1.442695, %v537_v40 }
 0x1ef   : > { %v2398_v45 = vpop.eup %2397  ;;  %v553_v46 = vmul.f32 1.442695, %v538_v41  ;;  %v1749_v47 = vadd.f32 -1.0, %v2396_v43 }
 0x1f0   : > { %2407 = vpow2.f32 %v551_v44  ;;  %v1750_v48 = vadd.f32 -1.0, %v2398_v45 }
 0x1f1   : > { %2409 = vpow2.f32 %v553_v46  ;;  %v3037_v53 = vsel %vm523_vm15, %v501_v55, %v1749_v47  ;;  %vm530_vm15 = vcmp.gt.f32.partialorder %v521_v39, 0.0 }
 0x1f2   : > { %v2400_v49 = vpop.eup %2399  ;;  %v3039_v54 = vsel %vm524_vm1, %v503_v57, %v1750_v48 }
 0x1f3   : > { %v2402_v50 = vpop.eup %2401  ;;  %v1751_v51 = vadd.f32 -1.0, %v2400_v49 }
 0x1f4   : > { %v1752_v52 = vadd.f32 -1.0, %v2402_v50 }
 0x1f5   : > { %v3041_v56 = vsel %vm525_vm2, %v507_v7, %v1751_v51 }
 0x1f6   : > { %v2404_v58 = vpop.eup %2403  ;;  %v3043_v59 = vsel %vm526_vm6, %v509_v15, %v1752_v52  ;;  %v2215_v61 = vpack.i.bf16 %v3041_v56, %v3037_v53  ;;  %v1982_v57 = vpack.c.bf16 %v3041_v56, %v3037_v53  ;;  %v703_v53 = vld [vmem:[#allocation6 + $0x38] sm:$0xff]  ;;  %v737_v56 = vld [vmem:[#allocation8 + $0x40] sm:$0xff] }
 0x1f7   : > { %v2406_v62 = vpop.eup %2405  ;;  %v2220_v63 = vpack.i.bf16 %v3043_v59, %v3039_v54  ;;  %v1980_v55 = vpack.c.bf16 %v3043_v59, %v3039_v54  ;;  %v1753_v3 = vadd.f32 -1.0, %v2404_v58  ;;  %v702_v54 = vld [vmem:[#allocation6 + $0x30] sm:$0xff]  ;;  %v738_v59 = vld [vmem:[#allocation8 + $0x48] sm:$0xff] }
 0x1f8   : > { %2216 = vrot.lane.b32.xlu0 %v2215_v61, %s2656_s18  ;;  %v1754_v7 = vadd.f32 -1.0, %v2406_v62 }
 0x1f9   : > { %2221 = vrot.lane.b32.xlu1 %v2220_v63, %s2656_s18  ;;  %v3055_v17 = vsel %vm527_vm8, %v513_v23, %v1753_v3 }
 0x1fa   : > { %v2408_v10 = vpop.eup %2407  ;;  %v3057_v19 = vsel %vm528_vm11, %v515_v26, %v1754_v7 }
 0x1fb   : > { %v2410_v11 = vpop.eup %2409  ;;  %v1755_v15 = vadd.f32 -1.0, %v2408_v10 }
 0x1fc   : > { %v1756_v16 = vadd.f32 -1.0, %v2410_v11 }
 0x1fd   : > { %v3059_v20 = vsel %vm529_vm13, %v519_v35, %v1755_v15 }
 0x1fe   : > { %v3061_v21 = vsel %vm530_vm15, %v521_v39, %v1756_v16  ;;  %v2225_v22 = vpack.i.bf16 %v3059_v20, %v3055_v17  ;;  %v1986_v23 = vpack.c.bf16 %v3059_v20, %v3055_v17  ;;  %v739_v20 = vld [vmem:[#allocation8 + $0x50] sm:$0xff] }
 0x1ff   : > { %v2235_v24 = vpack.i.bf16 %v3061_v21, %v3057_v19  ;;  %v1984_v25 = vpack.c.bf16 %v3061_v21, %v3057_v19 }
 0x200   : > { %2226 = vrot.lane.b32.xlu0 %v2225_v22, %s2656_s18 }
 0x201   : > { %2236 = vrot.lane.b32.xlu1 %v2235_v24, %s2656_s18 }
 0x204   : > { %2231 = vrot.lane.b32.xlu0 %v2215_v61, %s2657_s20 }
 0x205   : > { %2241 = vrot.lane.b32.xlu1 %v2220_v63, %s2657_s20 }
 0x208   : > { %2246 = vrot.lane.b32.xlu0 %v2225_v22, %s2657_s20 }
 0x209   : > { %2256 = vrot.lane.b32.xlu1 %v2235_v24, %s2657_s20 }
 0x20c   : > { %2251 = vrot.lane.b32.xlu0 %v2215_v61, %s2658_s29 }
 0x20d   : > { %2261 = vrot.lane.b32.xlu1 %v2220_v63, %s2658_s29 }
 0x210   : > { %2266 = vrot.lane.b32.xlu0 %v2225_v22, %s2658_s29 }
 0x211   : > { %2271 = vrot.lane.b32.xlu1 %v2235_v24, %s2658_s29 }
 0x26a   : > { %v2217_v26 = vpop.permute.xlu0 %2216 }
 0x26b   : > { %v2219_v27 = vunpack.i.h.bf16 %v2217_v26  ;;  %v2218_v28 = vunpack.i.l.bf16 %v2217_v26  ;;  %v2222_v29 = vpop.permute.xlu1 %2221 }
 0x26c   : > { %v2224_v30 = vunpack.i.h.bf16 %v2222_v29  ;;  %v2223_v31 = vunpack.i.l.bf16 %v2222_v29 }
 0x26e   : > { %v587_v32 = vsel %vm275_vm0, %v2218_v28, %v2223_v31  ;;  %v588_v35 = vsel %vm275_vm0, %v2219_v27, %v2224_v30  ;;  %v591_v36 = vsel %vm275_vm0, %v2223_v31, %v2218_v28  ;;  %v592_v37 = vsel %vm275_vm0, %v2224_v30, %v2219_v27 }
 0x26f   : > { %v1944_v39 = vpack.c.bf16 %v588_v35, %v587_v32  ;;  %v1947_v40 = vpack.c.bf16 %v592_v37, %v591_v36 }
 0x271   : > { %1946 = vmatprep.subr.msk.bf16.mxu1 %vm2932_vm4, %v1944_v39 }
 0x272   : > { %v2227_v41 = vpop.permute.xlu0 %2226  ;;  %1949 = vmatpush1.bf16.msk.msra.mxu1 %vm2940_vm5, %v1947_v40 }
 0x273   : > { %v2229_v43 = vunpack.i.h.bf16 %v2227_v41  ;;  %v2228_v44 = vunpack.i.l.bf16 %v2227_v41  ;;  %v2237_v45 = vpop.permute.xlu1 %2236 }
 0x274   : > { %v2239_v46 = vunpack.i.h.bf16 %v2237_v45  ;;  %v2238_v47 = vunpack.i.l.bf16 %v2237_v45 }
 0x276   : > { %v589_v48 = vsel %vm275_vm0, %v2228_v44, %v2238_v47  ;;  %v590_v49 = vsel %vm275_vm0, %v2229_v43, %v2239_v46  ;;  %v593_v50 = vsel %vm275_vm0, %v2238_v47, %v2228_v44  ;;  %v594_v51 = vsel %vm275_vm0, %v2239_v46, %v2229_v43  ;;  %v2232_v52 = vpop.permute.xlu0 %2231 }
 0x277   : > { %v1950_v58 = vpack.c.bf16 %v590_v49, %v589_v48  ;;  %v1953_v61 = vpack.c.bf16 %v594_v51, %v593_v50  ;;  %v2234_v62 = vunpack.i.h.bf16 %v2232_v52  ;;  %v2233_v63 = vunpack.i.l.bf16 %v2232_v52  ;;  %v2242_v3 = vpop.permute.xlu1 %2241 }
 0x278   : > { %v2244_v7 = vunpack.i.h.bf16 %v2242_v3  ;;  %v2243_v10 = vunpack.i.l.bf16 %v2242_v3 }
 0x279   : > { %1952 = vmatprep.subr.msk.bf16.mxu1 %vm2932_vm4, %v1950_v58 }
 0x27a   : > { %v627_v11 = vsel %vm316_vm3, %v2233_v63, %v2243_v10  ;;  %v628_v15 = vsel %vm316_vm3, %v2234_v62, %v2244_v7  ;;  %v631_v16 = vsel %vm316_vm3, %v2243_v10, %v2233_v63  ;;  %v632_v22 = vsel %vm316_vm3, %v2244_v7, %v2234_v62  ;;  %v2247_v24 = vpop.permute.xlu0 %2246  ;;  %1955 = vmatpush1.bf16.msk.msra.mxu1 %vm2940_vm5, %v1953_v61 }
 0x27b   : > { %v1956_v26 = vpack.c.bf16 %v628_v15, %v627_v11  ;;  %v1959_v27 = vpack.c.bf16 %v632_v22, %v631_v16  ;;  %v2249_v33 = vunpack.i.h.bf16 %v2247_v24  ;;  %v2248_v28 = vunpack.i.l.bf16 %v2247_v24  ;;  %v2257_v29 = vpop.permute.xlu1 %2256 }
 0x27c   : > { %v2259_v30 = vunpack.i.h.bf16 %v2257_v29  ;;  %v2258_v31 = vunpack.i.l.bf16 %v2257_v29 }
 0x27d   : > { %1958 = vmatprep.subr.msk.bf16.mxu1 %vm2963_vm7, %v1956_v26 }
 0x27e   : > { %v629_v32 = vsel %vm316_vm3, %v2248_v28, %v2258_v31  ;;  %v630_v35 = vsel %vm316_vm3, %v2249_v33, %v2259_v30  ;;  %v633_v38 = vsel %vm316_vm3, %v2258_v31, %v2248_v28  ;;  %v634_v36 = vsel %vm316_vm3, %v2259_v30, %v2249_v33  ;;  %v2252_v37 = vpop.permute.xlu0 %2251  ;;  %1961 = vmatpush1.bf16.msk.msra.mxu1 %vm2981_vm10, %v1959_v27  ;;  %v741_v31 = vld [vmem:[#allocation8 + $0x60] sm:$0xff] }
 0x27f   : > { %v1962_v39 = vpack.c.bf16 %v630_v35, %v629_v32  ;;  %v1965_v40 = vpack.c.bf16 %v634_v36, %v633_v38  ;;  %v2254_v41 = vunpack.i.h.bf16 %v2252_v37  ;;  %v2253_v43 = vunpack.i.l.bf16 %v2252_v37  ;;  %v2262_v44 = vpop.permute.xlu1 %2261  ;;  %v742_v35 = vld [vmem:[#allocation8 + $0x68] sm:$0xff] }
 0x280   : > { %v2264_v45 = vunpack.i.h.bf16 %v2262_v44  ;;  %v2263_v46 = vunpack.i.l.bf16 %v2262_v44  ;;  %v743_v44 = vld [vmem:[#allocation8 + $0x70] sm:$0xff] }
 0x281   : > { %1964 = vmatprep.subr.msk.bf16.mxu1 %vm2963_vm7, %v1962_v39 }
 0x282   : > { %v667_v47 = vsel %vm357_vm9, %v2253_v43, %v2263_v46  ;;  %v668_v48 = vsel %vm357_vm9, %v2254_v41, %v2264_v45  ;;  %v671_v49 = vsel %vm357_vm9, %v2263_v46, %v2253_v43  ;;  %v672_v50 = vsel %vm357_vm9, %v2264_v45, %v2254_v41  ;;  %v2267_v51 = vpop.permute.xlu0 %2266  ;;  %1967 = vmatpush1.bf16.msk.msra.mxu1 %vm2981_vm10, %v1965_v40  ;;  %v744_v46 = vld [vmem:[#allocation8 + $0x78] sm:$0xff] }
 0x283   : > { %v1968_v52 = vpack.c.bf16 %v668_v48, %v667_v47  ;;  %v1971_v58 = vpack.c.bf16 %v672_v50, %v671_v49  ;;  %v2269_v61 = vunpack.i.h.bf16 %v2267_v51  ;;  %v2268_v62 = vunpack.i.l.bf16 %v2267_v51  ;;  %v2272_v63 = vpop.permute.xlu1 %2271 }
 0x284   : > { %v2274_v3 = vunpack.i.h.bf16 %v2272_v63  ;;  %v2273_v7 = vunpack.i.l.bf16 %v2272_v63 }
 0x285   : > { %1970 = vmatprep.subr.msk.bf16.mxu1 %vm2998_vm12, %v1968_v52 }
 0x286   : > { %v669_v10 = vsel %vm357_vm9, %v2268_v62, %v2273_v7  ;;  %v670_v11 = vsel %vm357_vm9, %v2269_v61, %v2274_v3  ;;  %v673_v15 = vsel %vm357_vm9, %v2273_v7, %v2268_v62  ;;  %v674_v16 = vsel %vm357_vm9, %v2274_v3, %v2269_v61  ;;  %1973 = vmatpush1.bf16.msk.msra.mxu1 %vm3015_vm14, %v1971_v58 }
 0x287   : > { %v1974_v22 = vpack.c.bf16 %v670_v11, %v669_v10  ;;  %v1977_v24 = vpack.c.bf16 %v674_v16, %v673_v15 }
 0x289   : > { %1976 = vmatprep.subr.msk.bf16.mxu1 %vm2998_vm12, %v1974_v22 }
 0x28a   : > { %1979 = vmatpush1.bf16.msk.msra.mxu1 %vm3015_vm14, %v1977_v24 }
 0x28b   : > { %1981 = vmatprep.subr.bf16.mxu1 %v1980_v55 }
 0x28e   : > { %1983 = vmatpush1.bf16.msra.mxu1 %v1982_v57 }
 0x28f   : > { %1985 = vmatprep.subr.bf16.mxu1 %v1984_v25  ;;  %v740_v25 = vld [vmem:[#allocation8 + $0x58] sm:$0xff] }
 0x292   : > { %1987 = vmatpush1.bf16.msra.mxu1 %v1986_v23 }
 0x295   : > { %810 = vmatmul.mubr.f32.vlgmr.msra.gmra.mrb[0].mxu1 %v700_v34 }
 0x296   : > { %815 = vmatprep.mubr.f32.mxu1 %v2659_v12 }
 0x299   : > { %816 = vmatmul.mubr.f32.gmra.mrb[2].mxu1 %v701_v42 }
 0x29a   : > { %821 = vmatprep.mubr.f32.mxu1 %v2659_v12 }
 0x29d   : > { %822 = vmatmul.mubr.f32.gmra.mrb[4].mxu1 %v702_v54 }
 0x29e   : > { %827 = vmatprep.mubr.f32.mxu1 %v2659_v12 }
 0x2a1   : > { %828 = vmatmul.mubr.f32.gmra.mrb[6].mxu1 %v703_v53 }
 0x2a2   : > { %1493 = vmatprep.mubr.f32.mxu1 %v2659_v12 }
 0x368   : > { %v811_v55 = vpop.f32.mrb[0].mxu1 }
 0x369   : > { %v812_v57 = vadd.f32 %v811_v55, %v737_v56  ;;  %v813_v17 = vpop.f32.mrb[1].mxu1 }
 0x36a   : > { %v814_v19 = vadd.f32 %v813_v17, %v738_v59 }
 0x36b   : > { %v842_v21 = vmin.f32 %v812_v57, 0.0  ;;  %vm834_vm0 = vcmp.gt.f32.partialorder %v812_v57, 0.0 }
 0x36c   : > { %v843_v23 = vmin.f32 %v814_v19, 0.0  ;;  %v817_v26 = vpop.f32.mrb[2].mxu1  ;;  %vm835_vm4 = vcmp.gt.f32.partialorder %v814_v19, 0.0 }
 0x36d   : > { %v850_v27 = vmul.f32 1.442695, %v842_v21  ;;  %v818_v33 = vadd.f32 %v817_v26, %v739_v20  ;;  %v819_v28 = vpop.f32.mrb[3].mxu1 }
 0x36e   : > { %v852_v29 = vmul.f32 1.442695, %v843_v23  ;;  %v820_v30 = vadd.f32 %v819_v28, %v740_v25 }
 0x36f   : > { %2411 = vpow2.f32 %v850_v27  ;;  %v844_v32 = vmin.f32 %v818_v33, 0.0  ;;  %vm836_vm5 = vcmp.gt.f32.partialorder %v818_v33, 0.0 }
 0x370   : > { %2413 = vpow2.f32 %v852_v29  ;;  %v845_v38 = vmin.f32 %v820_v30, 0.0  ;;  %v823_v36 = vpop.f32.mrb[4].mxu1  ;;  %vm837_vm9 = vcmp.gt.f32.partialorder %v820_v30, 0.0 }
 0x371   : > { %v854_v37 = vmul.f32 1.442695, %v844_v32  ;;  %v824_v39 = vadd.f32 %v823_v36, %v741_v31  ;;  %v825_v40 = vpop.f32.mrb[5].mxu1 }
 0x372   : > { %v856_v41 = vmul.f32 1.442695, %v845_v38  ;;  %v826_v43 = vadd.f32 %v825_v40, %v742_v35 }
 0x373   : > { %2415 = vpow2.f32 %v854_v37  ;;  %v846_v45 = vmin.f32 %v824_v39, 0.0  ;;  %vm838_vm12 = vcmp.gt.f32.partialorder %v824_v39, 0.0 }
 0x374   : > { %2417 = vpow2.f32 %v856_v41  ;;  %v847_v47 = vmin.f32 %v826_v43, 0.0  ;;  %v829_v48 = vpop.f32.mrb[6].mxu1  ;;  %vm839_vm14 = vcmp.gt.f32.partialorder %v826_v43, 0.0 }
 0x375   : > { %v858_v49 = vmul.f32 1.442695, %v846_v45  ;;  %v830_v50 = vadd.f32 %v829_v48, %v743_v44  ;;  %v831_v51 = vpop.f32.mrb[7].mxu1 }
 0x376   : > { %v860_v52 = vmul.f32 1.442695, %v847_v47  ;;  %v3169_v58 = vadd.f32 %v831_v51, %v744_v46 }
 0x377   : > { %2419 = vpow2.f32 %v858_v49  ;;  %v848_v61 = vmin.f32 %v830_v50, 0.0  ;;  %vm840_vm1 = vcmp.gt.f32.partialorder %v830_v50, 0.0 }
 0x378   : > { %2421 = vpow2.f32 %v860_v52  ;;  %v849_v62 = vmin.f32 %v3169_v58, 0.0  ;;  %vm841_vm2 = vcmp.gt.f32.partialorder %v3169_v58, 0.0 }
 0x379   : > { %v2412_v63 = vpop.eup %2411  ;;  %v862_v3 = vmul.f32 1.442695, %v848_v61 }
 0x37a   : > { %v2414_v7 = vpop.eup %2413  ;;  %v1757_v10 = vadd.f32 -1.0, %v2412_v63  ;;  %v864_v11 = vmul.f32 1.442695, %v849_v62 }
 0x37b   : > { %v1758_v15 = vadd.f32 -1.0, %v2414_v7  ;;  %2423 = vpow2.f32 %v862_v3 }
 0x37c   : > { %v874_v16 = vsel %vm834_vm0, %v812_v57, %v1757_v10  ;;  %2425 = vpow2.f32 %v864_v11 }
 0x37d   : > { %v2416_v22 = vpop.eup %2415  ;;  %v3173_v24 = vadd.f32 %v874_v16, %v2881_v2  ;;  %v875_v34 = vsel %vm835_vm4, %v814_v19, %v1758_v15 }
 0x37e   : > { %v2418_v42 = vpop.eup %2417  ;;  %v3176_v54 = vadd.f32 %v875_v34, %v2893_v8  ;;  %v1759_v53 = vadd.f32 -1.0, %v2416_v22 }
 0x37f   : > { %v898_v56 = vmin.f32 %v3173_v24, 0.0  ;;  %v1760_v59 = vadd.f32 -1.0, %v2418_v42  ;;  %vm890_vm6 = vcmp.gt.f32.partialorder %v3173_v24, 0.0 }
 0x380   : > { %v899_v55 = vmin.f32 %v3176_v54, 0.0  ;;  %v876_v17 = vsel %vm836_vm5, %v818_v33, %v1759_v53  ;;  %vm891_vm11 = vcmp.gt.f32.partialorder %v3176_v54, 0.0 }
 0x381   : > { %v2420_v57 = vpop.eup %2419  ;;  %v906_v20 = vmul.f32 1.442695, %v898_v56  ;;  %v884_v21 = vadd.f32 %v876_v17, %v2885_v4  ;;  %v877_v2 = vsel %vm837_vm9, %v820_v30, %v1760_v59  ;;  %vm958_vm9 = vcmp.lt.s32.totalorder %v2915_v14, 6 }
 0x382   : > { %v2422_v25 = vpop.eup %2421  ;;  %v908_v19 = vmul.f32 1.442695, %v899_v55  ;;  %v885_v23 = vadd.f32 %v877_v2, %v2895_v9  ;;  %v1761_v8 = vadd.f32 -1.0, %v2420_v57 }
 0x383   : > { %2427 = vpow2.f32 %v906_v20  ;;  %v900_v26 = vmin.f32 %v884_v21, 0.0  ;;  %v1762_v27 = vadd.f32 -1.0, %v2422_v25  ;;  %vm892_vm8 = vcmp.gt.f32.partialorder %v884_v21, 0.0 }
 0x384   : > { %2429 = vpow2.f32 %v908_v19  ;;  %v901_v28 = vmin.f32 %v885_v23, 0.0  ;;  %v878_v29 = vsel %vm838_vm12, %v824_v39, %v1761_v8  ;;  %vm893_vm13 = vcmp.gt.f32.partialorder %v885_v23, 0.0 }
 0x385   : > { %v2424_v33 = vpop.eup %2423  ;;  %v910_v31 = vmul.f32 1.442695, %v900_v26  ;;  %v886_v32 = vadd.f32 %v878_v29, %v2877_v0  ;;  %v879_v35 = vsel %vm839_vm14, %v826_v43, %v1762_v27  ;;  %vm939_vm12 = vcmp.ge.s32.totalorder %v2918_v18, 6 }
 0x386   : > { %v2426_v4 = vpop.eup %2425  ;;  %v912_v30 = vmul.f32 1.442695, %v901_v28  ;;  %v887_v38 = vadd.f32 %v879_v35, %v2887_v5  ;;  %v1763_v36 = vadd.f32 -1.0, %v2424_v33  ;;  %vm938_vm14 = vcmp.ge.s32.totalorder %v2915_v14, 6 }
 0x387   : > { %2431 = vpow2.f32 %v910_v31  ;;  %v902_v9 = vmin.f32 %v886_v32, 0.0  ;;  %v1764_v37 = vadd.f32 -1.0, %v2426_v4  ;;  %vm894_vm15 = vcmp.gt.f32.partialorder %v886_v32, 0.0 }
 0x388   : > { %2433 = vpow2.f32 %v912_v30  ;;  %v903_v40 = vmin.f32 %v887_v38, 0.0  ;;  %v880_v41 = vsel %vm840_vm1, %v830_v50, %v1763_v36  ;;  %vm895_vm4 = vcmp.gt.f32.partialorder %v887_v38, 0.0  ;;  %vm3239_vm1 = vmpackc.low %vm939_vm12, %vm939_vm12 }
 0x389   : > { %v914_v39 = vmul.f32 1.442695, %v902_v9  ;;  %v888_v44 = vadd.f32 %v880_v41, %v2879_v1  ;;  %v881_v0 = vsel %vm841_vm2, %v3169_v58, %v1764_v37  ;;  %vm3243_vm2 = vmpackc.low %vm938_vm14, %vm938_vm14 }
 0x38a   : > { %v916_v43 = vmul.f32 1.442695, %v903_v40  ;;  %v889_v45 = vadd.f32 %v881_v0, %v2889_v6 }
 0x38b   : > { %2435 = vpow2.f32 %v914_v39  ;;  %v904_v5 = vmin.f32 %v888_v44, 0.0  ;;  %vm896_vm0 = vcmp.gt.f32.partialorder %v888_v44, 0.0 }
 0x38c   : > { %2437 = vpow2.f32 %v916_v43  ;;  %v905_v46 = vmin.f32 %v889_v45, 0.0  ;;  %vm897_vm5 = vcmp.gt.f32.partialorder %v889_v45, 0.0 }
 0x38d   : > { %v2428_v47 = vpop.eup %2427  ;;  %v918_v48 = vmul.f32 1.442695, %v904_v5 }
 0x38e   : > { %v2430_v49 = vpop.eup %2429  ;;  %v920_v51 = vmul.f32 1.442695, %v905_v46  ;;  %v1765_v50 = vadd.f32 -1.0, %v2428_v47 }
 0x38f   : > { %2439 = vpow2.f32 %v918_v48  ;;  %v1766_v61 = vadd.f32 -1.0, %v2430_v49 }
 0x390   : > { %2441 = vpow2.f32 %v920_v51  ;;  %v3191_v6 = vsel %vm890_vm6, %v3173_v24, %v1765_v50  ;;  %vm999_vm6 = vcmp.lt.s32.totalorder %v2915_v14, 4 }
 0x391   : > { %v2432_v52 = vpop.eup %2431  ;;  %v3198_v10 = vsel %vm891_vm11, %v3176_v54, %v1766_v61  ;;  %vm940_vm11 = vcmp.ge.s32.totalorder %v2915_v14, 4  ;;  %v1384_v14 = vld [vmem:[#allocation6 + $0x60] sm:$0xff] }
 0x392   : > { %v2434_v62 = vpop.eup %2433  ;;  %v1767_v1 = vadd.f32 -1.0, %v2432_v52 }
 0x393   : > { %v1768_v58 = vadd.f32 -1.0, %v2434_v62 }
 0x394   : > { %v3193_v63 = vsel %vm892_vm8, %v884_v21, %v1767_v1  ;;  %vm941_vm8 = vcmp.ge.s32.totalorder %v2918_v18, 4 }
 0x395   : > { %v2436_v3 = vpop.eup %2435  ;;  %v2275_v7 = vpack.i.bf16 %v3193_v63, %v3191_v6  ;;  %v3200_v11 = vsel %vm893_vm13, %v885_v23, %v1768_v58  ;;  %vm3277_vm13 = vmpackc.low %vm941_vm8, %vm941_vm8 }
 0x396   : > { %v2438_v15 = vpop.eup %2437  ;;  %v2280_v16 = vpack.i.bf16 %v3200_v11, %v3198_v10  ;;  %v1769_v22 = vadd.f32 -1.0, %v2436_v3 }
 0x397   : > { %2276 = vrot.lane.b32.xlu0 %v2275_v7, %s2660_s30  ;;  %v1770_v34 = vadd.f32 -1.0, %v2438_v15 }
 0x398   : > { %2281 = vrot.lane.b32.xlu1 %v2280_v16, %s2660_s30  ;;  %v3206_v56 = vsel %vm894_vm15, %v886_v32, %v1769_v22  ;;  %vm3281_vm15 = vmpackc.low %vm940_vm11, %vm940_vm11 }
 0x399   : > { %v2440_v24 = vpop.eup %2439  ;;  %v3212_v17 = vsel %vm895_vm4, %v887_v38, %v1770_v34 }
 0x39a   : > { %v2442_v42 = vpop.eup %2441  ;;  %v1771_v53 = vadd.f32 -1.0, %v2440_v24 }
 0x39b   : > { %v1772_v54 = vadd.f32 -1.0, %v2442_v42 }
 0x39c   : > { %v3208_v59 = vsel %vm896_vm0, %v888_v44, %v1771_v53 }
 0x39d   : > { %v2285_v55 = vpack.i.bf16 %v3208_v59, %v3206_v56  ;;  %v3214_v57 = vsel %vm897_vm5, %v889_v45, %v1772_v54 }
 0x39e   : > { %v2295_v20 = vpack.i.bf16 %v3214_v57, %v3212_v17 }
 0x39f   : > { %2286 = vrot.lane.b32.xlu0 %v2285_v55, %s2660_s30 }
 0x3a0   : > { %2296 = vrot.lane.b32.xlu1 %v2295_v20, %s2660_s30 }
 0x3a3   : > { %2291 = vrot.lane.b32.xlu0 %v2275_v7, %s2661_s24 }
 0x3a4   : > { %2301 = vrot.lane.b32.xlu1 %v2280_v16, %s2661_s24 }
 0x3a7   : > { %2306 = vrot.lane.b32.xlu0 %v2285_v55, %s2661_s24 }
 0x3a8   : > { %2316 = vrot.lane.b32.xlu1 %v2295_v20, %s2661_s24 }
 0x3ab   : > { %2311 = vrot.lane.b32.xlu0 %v2275_v7, %s2657_s20 }
 0x3ac   : > { %2321 = vrot.lane.b32.xlu1 %v2280_v16, %s2657_s20 }
 0x3af   : > { %2326 = vrot.lane.b32.xlu0 %v2285_v55, %s2657_s20 }
 0x3b0   : > { %2331 = vrot.lane.b32.xlu1 %v2295_v20, %s2657_s20 }
 0x409   : > { %v2277_v21 = vpop.permute.xlu0 %2276 }
 0x40a   : > { %v2279_v2 = vunpack.i.h.bf16 %v2277_v21  ;;  %v2278_v25 = vunpack.i.l.bf16 %v2277_v21  ;;  %v2282_v19 = vpop.permute.xlu1 %2281 }
 0x40b   : > { %v2284_v23 = vunpack.i.h.bf16 %v2282_v19  ;;  %v2283_v8 = vunpack.i.l.bf16 %v2282_v19 }
 0x40d   : > { %v959_v26 = vsel %vm958_vm9, %v2278_v25, %v2283_v8  ;;  %v960_v27 = vsel %vm958_vm9, %v2279_v2, %v2284_v23  ;;  %v963_v28 = vsel %vm958_vm9, %v2283_v8, %v2278_v25  ;;  %v964_v29 = vsel %vm958_vm9, %v2284_v23, %v2279_v2 }
 0x40e   : > { %v1988_v31 = vpack.c.bf16 %v960_v27, %v959_v26  ;;  %v1991_v32 = vpack.c.bf16 %v964_v29, %v963_v28 }
 0x410   : > { %1990 = vmatprep.subr.msk.bf16.mxu0 %vm3239_vm1, %v1988_v31 }
 0x411   : > { %v2287_v4 = vpop.permute.xlu0 %2286  ;;  %1993 = vmatpush1.bf16.msk.msra.mxu0 %vm3243_vm2, %v1991_v32 }
 0x412   : > { %v2289_v30 = vunpack.i.h.bf16 %v2287_v4  ;;  %v2288_v38 = vunpack.i.l.bf16 %v2287_v4  ;;  %v2297_v36 = vpop.permute.xlu1 %2296 }
 0x413   : > { %v2299_v9 = vunpack.i.h.bf16 %v2297_v36  ;;  %v2298_v37 = vunpack.i.l.bf16 %v2297_v36 }
 0x415   : > { %v961_v40 = vsel %vm958_vm9, %v2288_v38, %v2298_v37  ;;  %v962_v41 = vsel %vm958_vm9, %v2289_v30, %v2299_v9  ;;  %v965_v39 = vsel %vm958_vm9, %v2298_v37, %v2288_v38  ;;  %v966_v44 = vsel %vm958_vm9, %v2299_v9, %v2289_v30  ;;  %v2292_v0 = vpop.permute.xlu0 %2291 }
 0x416   : > { %v1994_v43 = vpack.c.bf16 %v962_v41, %v961_v40  ;;  %v1997_v45 = vpack.c.bf16 %v966_v44, %v965_v39  ;;  %v2294_v5 = vunpack.i.h.bf16 %v2292_v0  ;;  %v2293_v46 = vunpack.i.l.bf16 %v2292_v0  ;;  %v2302_v47 = vpop.permute.xlu1 %2301 }
 0x417   : > { %v2304_v48 = vunpack.i.h.bf16 %v2302_v47  ;;  %v2303_v49 = vunpack.i.l.bf16 %v2302_v47  ;;  %v2030_v47 = vpack.c.bf16 %v3208_v59, %v3206_v56 }
 0x418   : > { %1996 = vmatprep.subr.msk.bf16.mxu0 %vm3239_vm1, %v1994_v43 }
 0x419   : > { %v1000_v51 = vsel %vm999_vm6, %v2293_v46, %v2303_v49  ;;  %v1001_v50 = vsel %vm999_vm6, %v2294_v5, %v2304_v48  ;;  %v1004_v52 = vsel %vm999_vm6, %v2303_v49, %v2293_v46  ;;  %v1005_v61 = vsel %vm999_vm6, %v2304_v48, %v2294_v5  ;;  %v2307_v62 = vpop.permute.xlu0 %2306  ;;  %1999 = vmatpush1.bf16.msk.msra.mxu0 %vm3243_vm2, %v1997_v45  ;;  %v1073_v48 = vld [vmem:[#allocation6 + $0x40] sm:$0xff]  ;;  %v1074_v49 = vld [vmem:[#allocation6 + $0x48] sm:$0xff] }
 0x41a   : > { %v2000_v58 = vpack.c.bf16 %v1001_v50, %v1000_v51  ;;  %v2003_v3 = vpack.c.bf16 %v1005_v61, %v1004_v52  ;;  %v2309_v7 = vunpack.i.h.bf16 %v2307_v62  ;;  %v2308_v15 = vunpack.i.l.bf16 %v2307_v62  ;;  %v2317_v16 = vpop.permute.xlu1 %2316  ;;  %v1075_v51 = vld [vmem:[#allocation6 + $0x50] sm:$0xff]  ;;  %v1076_v50 = vld [vmem:[#allocation6 + $0x58] sm:$0xff]  ;;  %v1110_v52 = vld [vmem:[#allocation8 + $0x80] sm:$0xff] }
 0x41b   : > { %v2319_v24 = vunpack.i.h.bf16 %v2317_v16  ;;  %v2318_v34 = vunpack.i.l.bf16 %v2317_v16  ;;  %v2024_v45 = vpack.c.bf16 %v3200_v11, %v3198_v10  ;;  %v2026_v5 = vpack.c.bf16 %v3193_v63, %v3191_v6  ;;  %v1111_v61 = vld [vmem:[#allocation8 + $0x88] sm:$0xff] }
 0x41c   : > { %2002 = vmatprep.subr.msk.bf16.mxu0 %vm3277_vm13, %v2000_v58  ;;  %v2028_v46 = vpack.c.bf16 %v3214_v57, %v3212_v17 }
 0x41d   : > { %v1002_v18 = vsel %vm999_vm6, %v2308_v15, %v2318_v34  ;;  %v1003_v42 = vsel %vm999_vm6, %v2309_v7, %v2319_v24  ;;  %v1006_v53 = vsel %vm999_vm6, %v2318_v34, %v2308_v15  ;;  %v1007_v54 = vsel %vm999_vm6, %v2319_v24, %v2309_v7  ;;  %v2312_v55 = vpop.permute.xlu0 %2311  ;;  %2005 = vmatpush1.bf16.msk.msra.mxu0 %vm3281_vm15, %v2003_v3  ;;  %v1112_v15 = vld [vmem:[#allocation8 + $0x90] sm:$0xff]  ;;  %v1113_v24 = vld [vmem:[#allocation8 + $0x98] sm:$0xff] }
 0x41e   : > { %v2006_v20 = vpack.c.bf16 %v1003_v42, %v1002_v18  ;;  %v2009_v21 = vpack.c.bf16 %v1007_v54, %v1006_v53  ;;  %v2314_v2 = vunpack.i.h.bf16 %v2312_v55  ;;  %v2313_v25 = vunpack.i.l.bf16 %v2312_v55  ;;  %v2322_v19 = vpop.permute.xlu1 %2321 }
 0x41f   : > { %v2324_v23 = vunpack.i.h.bf16 %v2322_v19  ;;  %v2323_v8 = vunpack.i.l.bf16 %v2322_v19 }
 0x420   : > { %2008 = vmatprep.subr.msk.bf16.mxu0 %vm3277_vm13, %v2006_v20 }
 0x421   : > { %v1040_v26 = vsel %vm316_vm3, %v2313_v25, %v2323_v8  ;;  %v1041_v27 = vsel %vm316_vm3, %v2314_v2, %v2324_v23  ;;  %v1044_v28 = vsel %vm316_vm3, %v2323_v8, %v2313_v25  ;;  %v1045_v29 = vsel %vm316_vm3, %v2324_v23, %v2314_v2  ;;  %v2327_v31 = vpop.permute.xlu0 %2326  ;;  %2011 = vmatpush1.bf16.msk.msra.mxu0 %vm3281_vm15, %v2009_v21  ;;  %v1114_v21 = vld [vmem:[#allocation8 + $0xa0] sm:$0xff]  ;;  %v1115_v25 = vld [vmem:[#allocation8 + $0xa8] sm:$0xff] }
 0x422   : > { %v2012_v32 = vpack.c.bf16 %v1041_v27, %v1040_v26  ;;  %v2015_v4 = vpack.c.bf16 %v1045_v29, %v1044_v28  ;;  %v2329_v30 = vunpack.i.h.bf16 %v2327_v31  ;;  %v2328_v38 = vunpack.i.l.bf16 %v2327_v31  ;;  %v2332_v36 = vpop.permute.xlu1 %2331  ;;  %v1116_v31 = vld [vmem:[#allocation8 + $0xb0] sm:$0xff] }
 0x423   : > { %v2334_v9 = vunpack.i.h.bf16 %v2332_v36  ;;  %v2333_v37 = vunpack.i.l.bf16 %v2332_v36 }
 0x424   : > { %2014 = vmatprep.subr.msk.bf16.mxu0 %vm2963_vm7, %v2012_v32 }
 0x425   : > { %v1042_v40 = vsel %vm316_vm3, %v2328_v38, %v2333_v37  ;;  %v1043_v41 = vsel %vm316_vm3, %v2329_v30, %v2334_v9  ;;  %v1046_v39 = vsel %vm316_vm3, %v2333_v37, %v2328_v38  ;;  %v1047_v44 = vsel %vm316_vm3, %v2334_v9, %v2329_v30  ;;  %2017 = vmatpush1.bf16.msk.msra.mxu0 %vm2981_vm10, %v2015_v4  ;;  %v1117_v4 = vld [vmem:[#allocation8 + $0xb8] sm:$0xff] }
 0x426   : > { %v2018_v0 = vpack.c.bf16 %v1043_v41, %v1042_v40  ;;  %v2021_v43 = vpack.c.bf16 %v1047_v44, %v1046_v39 }
 0x428   : > { %2020 = vmatprep.subr.msk.bf16.mxu0 %vm2963_vm7, %v2018_v0 }
 0x429   : > { %2023 = vmatpush1.bf16.msk.msra.mxu0 %vm2981_vm10, %v2021_v43 }
 0x42a   : > { %2025 = vmatprep.subr.bf16.mxu0 %v2024_v45 }
 0x42d   : > { %2027 = vmatpush1.bf16.msra.mxu0 %v2026_v5 }
 0x42e   : > { %2029 = vmatprep.subr.bf16.mxu0 %v2028_v46 }
 0x431   : > { %2031 = vmatpush1.bf16.msra.mxu0 %v2030_v47 }
 0x434   : > { %1183 = vmatmul.mubr.f32.vlgmr.msra.gmra.mrb[8].mxu0 %v1073_v48 }
 0x435   : > { %1188 = vmatprep.mubr.f32.mxu0 %v2659_v12 }
 0x438   : > { %1189 = vmatmul.mubr.f32.gmra.mrb[10].mxu0 %v1074_v49 }
 0x439   : > { %1194 = vmatprep.mubr.f32.mxu0 %v2659_v12 }
 0x43c   : > { %1195 = vmatmul.mubr.f32.gmra.mrb[12].mxu0 %v1075_v51 }
 0x43d   : > { %1200 = vmatprep.mubr.f32.mxu0 %v2659_v12 }
 0x440   : > { %1201 = vmatmul.mubr.f32.gmra.mrb[14].mxu0 %v1076_v50 }
 0x507   : > { %v1184_v62 = vpop.f32.mrb[8].mxu0 }
 0x508   : > { %v1185_v58 = vadd.f32 %v1184_v62, %v1110_v52  ;;  %v1186_v3 = vpop.f32.mrb[9].mxu0 }
 0x509   : > { %v1187_v7 = vadd.f32 %v1186_v3, %v1111_v61 }
 0x50a   : > { %v1215_v16 = vmin.f32 %v1185_v58, 0.0  ;;  %vm1207_vm0 = vcmp.gt.f32.partialorder %v1185_v58, 0.0 }
 0x50b   : > { %v1216_v34 = vmin.f32 %v1187_v7, 0.0  ;;  %v1190_v18 = vpop.f32.mrb[10].mxu0  ;;  %vm1208_vm4 = vcmp.gt.f32.partialorder %v1187_v7, 0.0 }
 0x50c   : > { %v1223_v42 = vmul.f32 1.442695, %v1215_v16  ;;  %v1191_v53 = vadd.f32 %v1190_v18, %v1112_v15  ;;  %v1192_v54 = vpop.f32.mrb[11].mxu0 }
 0x50d   : > { %v1225_v55 = vmul.f32 1.442695, %v1216_v34  ;;  %v1193_v20 = vadd.f32 %v1192_v54, %v1113_v24 }
 0x50e   : > { %2443 = vpow2.f32 %v1223_v42  ;;  %v1217_v2 = vmin.f32 %v1191_v53, 0.0  ;;  %vm1209_vm5 = vcmp.gt.f32.partialorder %v1191_v53, 0.0 }
 0x50f   : > { %2445 = vpow2.f32 %v1225_v55  ;;  %v1218_v19 = vmin.f32 %v1193_v20, 0.0  ;;  %v1196_v23 = vpop.f32.mrb[12].mxu0  ;;  %vm1210_vm12 = vcmp.gt.f32.partialorder %v1193_v20, 0.0 }
 0x510   : > { %v1227_v8 = vmul.f32 1.442695, %v1217_v2  ;;  %v1197_v26 = vadd.f32 %v1196_v23, %v1114_v21  ;;  %v1198_v27 = vpop.f32.mrb[13].mxu0 }
 0x511   : > { %v1229_v28 = vmul.f32 1.442695, %v1218_v19  ;;  %v1199_v29 = vadd.f32 %v1198_v27, %v1115_v25 }
 0x512   : > { %2447 = vpow2.f32 %v1227_v8  ;;  %v1219_v32 = vmin.f32 %v1197_v26, 0.0  ;;  %vm1211_vm14 = vcmp.gt.f32.partialorder %v1197_v26, 0.0 }
 0x513   : > { %2449 = vpow2.f32 %v1229_v28  ;;  %v1220_v30 = vmin.f32 %v1199_v29, 0.0  ;;  %v1202_v38 = vpop.f32.mrb[14].mxu0  ;;  %vm1212_vm8 = vcmp.gt.f32.partialorder %v1199_v29, 0.0 }
 0x514   : > { %v1231_v36 = vmul.f32 1.442695, %v1219_v32  ;;  %v1203_v9 = vadd.f32 %v1202_v38, %v1116_v31  ;;  %v1204_v37 = vpop.f32.mrb[15].mxu0 }
 0x515   : > { %v1233_v40 = vmul.f32 1.442695, %v1220_v30  ;;  %v1205_v41 = vadd.f32 %v1204_v37, %v1117_v4 }
 0x516   : > { %2451 = vpow2.f32 %v1231_v36  ;;  %v1221_v39 = vmin.f32 %v1203_v9, 0.0  ;;  %vm1213_vm11 = vcmp.gt.f32.partialorder %v1203_v9, 0.0 }
 0x517   : > { %2453 = vpow2.f32 %v1233_v40  ;;  %v1222_v44 = vmin.f32 %v1205_v41, 0.0 }
 0x518   : > { %v2444_v0 = vpop.eup %2443  ;;  %v1235_v43 = vmul.f32 1.442695, %v1221_v39 }
 0x519   : > { %v2446_v45 = vpop.eup %2445  ;;  %v1237_v5 = vmul.f32 1.442695, %v1222_v44  ;;  %v1773_v46 = vadd.f32 -1.0, %v2444_v0 }
 0x51a   : > { %2455 = vpow2.f32 %v1235_v43  ;;  %v1774_v47 = vadd.f32 -1.0, %v2446_v45 }
 0x51b   : > { %2457 = vpow2.f32 %v1237_v5  ;;  %v3336_v52 = vsel %vm1207_vm0, %v1185_v58, %v1773_v46  ;;  %vm1214_vm0 = vcmp.gt.f32.partialorder %v1205_v41, 0.0 }
 0x51c   : > { %v2448_v48 = vpop.eup %2447  ;;  %v3338_v61 = vsel %vm1208_vm4, %v1187_v7, %v1774_v47 }
 0x51d   : > { %v2450_v49 = vpop.eup %2449  ;;  %v1775_v51 = vadd.f32 -1.0, %v2448_v48 }
 0x51e   : > { %v1776_v50 = vadd.f32 -1.0, %v2450_v49 }
 0x51f   : > { %v3340_v62 = vsel %vm1209_vm5, %v1191_v53, %v1775_v51 }
 0x520   : > { %v2452_v3 = vpop.eup %2451  ;;  %v3342_v15 = vsel %vm1210_vm12, %v1193_v20, %v1776_v50  ;;  %v2335_v16 = vpack.i.bf16 %v3340_v62, %v3336_v52  ;;  %v2070_v7 = vpack.c.bf16 %v3340_v62, %v3336_v52  ;;  %v1387_v52 = vld [vmem:[#allocation6 + $0x78] sm:$0xff]  ;;  %v1422_v62 = vld [vmem:[#allocation8 + $0xc8] sm:$0xff] }
 0x521   : > { %v2454_v24 = vpop.eup %2453  ;;  %v2340_v34 = vpack.i.bf16 %v3342_v15, %v3338_v61  ;;  %v2068_v58 = vpack.c.bf16 %v3342_v15, %v3338_v61  ;;  %v1777_v18 = vadd.f32 -1.0, %v2452_v3  ;;  %v1421_v61 = vld [vmem:[#allocation8 + $0xc0] sm:$0xff] }
 0x522   : > { %2336 = vrot.lane.b32.xlu0 %v2335_v16, %s2660_s30  ;;  %v1778_v42 = vadd.f32 -1.0, %v2454_v24 }
 0x523   : > { %2341 = vrot.lane.b32.xlu1 %v2340_v34, %s2660_s30  ;;  %v3354_v21 = vsel %vm1211_vm14, %v1197_v26, %v1777_v18 }
 0x524   : > { %v2456_v53 = vpop.eup %2455  ;;  %v3356_v2 = vsel %vm1212_vm8, %v1199_v29, %v1778_v42 }
 0x525   : > { %v2458_v54 = vpop.eup %2457  ;;  %v1779_v55 = vadd.f32 -1.0, %v2456_v53 }
 0x526   : > { %v1780_v20 = vadd.f32 -1.0, %v2458_v54 }
 0x527   : > { %v3358_v25 = vsel %vm1213_vm11, %v1203_v9, %v1779_v55 }
 0x528   : > { %v3360_v19 = vsel %vm1214_vm0, %v1205_v41, %v1780_v20  ;;  %v2345_v23 = vpack.i.bf16 %v3358_v25, %v3354_v21  ;;  %v2074_v26 = vpack.c.bf16 %v3358_v25, %v3354_v21 }
 0x529   : > { %v2355_v8 = vpack.i.bf16 %v3360_v19, %v3356_v2  ;;  %v2072_v27 = vpack.c.bf16 %v3360_v19, %v3356_v2  ;;  %v1423_v2 = vld [vmem:[#allocation8 + $0xd0] sm:$0xff]  ;;  %v1424_v19 = vld [vmem:[#allocation8 + $0xd8] sm:$0xff] }
 0x52a   : > { %2346 = vrot.lane.b32.xlu0 %v2345_v23, %s2660_s30 }
 0x52b   : > { %2356 = vrot.lane.b32.xlu1 %v2355_v8, %s2660_s30 }
 0x52e   : > { %2351 = vrot.lane.b32.xlu0 %v2335_v16, %s2661_s24 }
 0x52f   : > { %2361 = vrot.lane.b32.xlu1 %v2340_v34, %s2661_s24 }
 0x532   : > { %2366 = vrot.lane.b32.xlu0 %v2345_v23, %s2661_s24 }
 0x533   : > { %2376 = vrot.lane.b32.xlu1 %v2355_v8, %s2661_s24 }
 0x536   : > { %2371 = vrot.lane.b32.xlu0 %v2335_v16, %s2657_s20 }
 0x537   : > { %2381 = vrot.lane.b32.xlu1 %v2340_v34, %s2657_s20 }
 0x53a   : > { %2386 = vrot.lane.b32.xlu0 %v2345_v23, %s2657_s20 }
 0x53b   : > { %2391 = vrot.lane.b32.xlu1 %v2355_v8, %s2657_s20 }
 0x594   : > { %v2337_v28 = vpop.permute.xlu0 %2336 }
 0x595   : > { %v2339_v29 = vunpack.i.h.bf16 %v2337_v28  ;;  %v2338_v31 = vunpack.i.l.bf16 %v2337_v28  ;;  %v2342_v32 = vpop.permute.xlu1 %2341 }
 0x596   : > { %v2344_v4 = vunpack.i.h.bf16 %v2342_v32  ;;  %v2343_v30 = vunpack.i.l.bf16 %v2342_v32 }
 0x598   : > { %v1271_v38 = vsel %vm958_vm9, %v2338_v31, %v2343_v30  ;;  %v1272_v36 = vsel %vm958_vm9, %v2339_v29, %v2344_v4  ;;  %v1275_v9 = vsel %vm958_vm9, %v2343_v30, %v2338_v31  ;;  %v1276_v37 = vsel %vm958_vm9, %v2344_v4, %v2339_v29 }
 0x599   : > { %v2032_v40 = vpack.c.bf16 %v1272_v36, %v1271_v38  ;;  %v2035_v41 = vpack.c.bf16 %v1276_v37, %v1275_v9 }
 0x59b   : > { %2034 = vmatprep.subr.msk.bf16.mxu1 %vm3239_vm1, %v2032_v40 }
 0x59c   : > { %v2347_v39 = vpop.permute.xlu0 %2346  ;;  %2037 = vmatpush1.bf16.msk.msra.mxu1 %vm3243_vm2, %v2035_v41 }
 0x59d   : > { %v2349_v44 = vunpack.i.h.bf16 %v2347_v39  ;;  %v2348_v0 = vunpack.i.l.bf16 %v2347_v39  ;;  %v2357_v43 = vpop.permute.xlu1 %2356 }
 0x59e   : > { %v2359_v45 = vunpack.i.h.bf16 %v2357_v43  ;;  %v2358_v5 = vunpack.i.l.bf16 %v2357_v43 }
 0x5a0   : > { %v1273_v46 = vsel %vm958_vm9, %v2348_v0, %v2358_v5  ;;  %v1274_v47 = vsel %vm958_vm9, %v2349_v44, %v2359_v45  ;;  %v1277_v48 = vsel %vm958_vm9, %v2358_v5, %v2348_v0  ;;  %v1278_v49 = vsel %vm958_vm9, %v2359_v45, %v2349_v44  ;;  %v2352_v51 = vpop.permute.xlu0 %2351 }
 0x5a1   : > { %v2038_v50 = vpack.c.bf16 %v1274_v47, %v1273_v46  ;;  %v2041_v3 = vpack.c.bf16 %v1278_v49, %v1277_v48  ;;  %v2354_v16 = vunpack.i.h.bf16 %v2352_v51  ;;  %v2353_v24 = vunpack.i.l.bf16 %v2352_v51  ;;  %v2362_v34 = vpop.permute.xlu1 %2361 }
 0x5a2   : > { %v2364_v18 = vunpack.i.h.bf16 %v2362_v34  ;;  %v2363_v42 = vunpack.i.l.bf16 %v2362_v34 }
 0x5a3   : > { %2040 = vmatprep.subr.msk.bf16.mxu1 %vm3239_vm1, %v2038_v50 }
 0x5a4   : > { %v1311_v53 = vsel %vm999_vm6, %v2353_v24, %v2363_v42  ;;  %v1312_v54 = vsel %vm999_vm6, %v2354_v16, %v2364_v18  ;;  %v1315_v55 = vsel %vm999_vm6, %v2363_v42, %v2353_v24  ;;  %v1316_v20 = vsel %vm999_vm6, %v2364_v18, %v2354_v16  ;;  %v2367_v23 = vpop.permute.xlu0 %2366  ;;  %2043 = vmatpush1.bf16.msk.msra.mxu1 %vm3243_vm2, %v2041_v3 }
 0x5a5   : > { %v2044_v8 = vpack.c.bf16 %v1312_v54, %v1311_v53  ;;  %v2047_v28 = vpack.c.bf16 %v1316_v20, %v1315_v55  ;;  %v2369_v33 = vunpack.i.h.bf16 %v2367_v23  ;;  %v2368_v29 = vunpack.i.l.bf16 %v2367_v23  ;;  %v2377_v31 = vpop.permute.xlu1 %2376 }
 0x5a6   : > { %v2379_v32 = vunpack.i.h.bf16 %v2377_v31  ;;  %v2378_v4 = vunpack.i.l.bf16 %v2377_v31 }
 0x5a7   : > { %2046 = vmatprep.subr.msk.bf16.mxu1 %vm3277_vm13, %v2044_v8 }
 0x5a8   : > { %v1313_v30 = vsel %vm999_vm6, %v2368_v29, %v2378_v4  ;;  %v1314_v38 = vsel %vm999_vm6, %v2369_v33, %v2379_v32  ;;  %v1317_v35 = vsel %vm999_vm6, %v2378_v4, %v2368_v29  ;;  %v1318_v36 = vsel %vm999_vm6, %v2379_v32, %v2369_v33  ;;  %v2372_v9 = vpop.permute.xlu0 %2371  ;;  %2049 = vmatpush1.bf16.msk.msra.mxu1 %vm3281_vm15, %v2047_v28  ;;  %v1425_v33 = vld [vmem:[#allocation8 + $0xe0] sm:$0xff]  ;;  %v1426_v29 = vld [vmem:[#allocation8 + $0xe8] sm:$0xff] }
 0x5a9   : > { %v2050_v37 = vpack.c.bf16 %v1314_v38, %v1313_v30  ;;  %v2053_v40 = vpack.c.bf16 %v1318_v36, %v1317_v35  ;;  %v2374_v41 = vunpack.i.h.bf16 %v2372_v9  ;;  %v2373_v39 = vunpack.i.l.bf16 %v2372_v9  ;;  %v2382_v44 = vpop.permute.xlu1 %2381  ;;  %v1427_v9 = vld [vmem:[#allocation8 + $0xf0] sm:$0xff] }
 0x5aa   : > { %v2384_v0 = vunpack.i.h.bf16 %v2382_v44  ;;  %v2383_v43 = vunpack.i.l.bf16 %v2382_v44 }
 0x5ab   : > { %2052 = vmatprep.subr.msk.bf16.mxu1 %vm3277_vm13, %v2050_v37 }
 0x5ac   : > { %v1351_v45 = vsel %vm316_vm3, %v2373_v39, %v2383_v43  ;;  %v1352_v5 = vsel %vm316_vm3, %v2374_v41, %v2384_v0  ;;  %v1355_v46 = vsel %vm316_vm3, %v2383_v43, %v2373_v39  ;;  %v1356_v47 = vsel %vm316_vm3, %v2384_v0, %v2374_v41  ;;  %v2387_v48 = vpop.permute.xlu0 %2386  ;;  %2055 = vmatpush1.bf16.msk.msra.mxu1 %vm3281_vm15, %v2053_v40  ;;  %v1428_v40 = vld [vmem:[#allocation8 + $0xf8] sm:$0xff] }
 0x5ad   : > { %v2056_v49 = vpack.c.bf16 %v1352_v5, %v1351_v45  ;;  %v2059_v51 = vpack.c.bf16 %v1356_v47, %v1355_v46  ;;  %v2389_v1 = vunpack.i.h.bf16 %v2387_v48  ;;  %v2388_v50 = vunpack.i.l.bf16 %v2387_v48  ;;  %v2392_v3 = vpop.permute.xlu1 %2391 }
 0x5ae   : > { %v2394_v16 = vunpack.i.h.bf16 %v2392_v3  ;;  %v2393_v24 = vunpack.i.l.bf16 %v2392_v3 }
 0x5af   : > { %2058 = vmatprep.subr.msk.bf16.mxu1 %vm2963_vm7, %v2056_v49 }
 0x5b0   : > { %v1353_v34 = vsel %vm316_vm3, %v2388_v50, %v2393_v24  ;;  %v1354_v18 = vsel %vm316_vm3, %v2389_v1, %v2394_v16  ;;  %v1357_v22 = vsel %vm316_vm3, %v2393_v24, %v2388_v50  ;;  %v1358_v42 = vsel %vm316_vm3, %v2394_v16, %v2389_v1  ;;  %2061 = vmatpush1.bf16.msk.msra.mxu1 %vm2981_vm10, %v2059_v51 }
 0x5b1   : > { %v2062_v53 = vpack.c.bf16 %v1354_v18, %v1353_v34  ;;  %v2065_v54 = vpack.c.bf16 %v1358_v42, %v1357_v22 }
 0x5b3   : > { %2064 = vmatprep.subr.msk.bf16.mxu1 %vm2963_vm7, %v2062_v53 }
 0x5b4   : > { %2067 = vmatpush1.bf16.msk.msra.mxu1 %vm2981_vm10, %v2065_v54 }
 0x5b5   : > { %2069 = vmatprep.subr.bf16.mxu1 %v2068_v58 }
 0x5b8   : > { %2071 = vmatpush1.bf16.msra.mxu1 %v2070_v7 }
 0x5b9   : > { %2073 = vmatprep.subr.bf16.mxu1 %v2072_v27 }
 0x5bc   : > { %2075 = vmatpush1.bf16.msra.mxu1 %v2074_v26 }
 0x5bf   : > { %1494 = vmatmul.mubr.f32.vlgmr.msra.gmra.mrb[8].mxu1 %v1384_v14 }
 0x5c0   : > { %1499 = vmatprep.mubr.f32.mxu1 %v2659_v12 }
 0x5c3   : > { %1500 = vmatmul.mubr.f32.gmra.mrb[10].mxu1 %v1385_v60 }
 0x5c4   : > { %1505 = vmatprep.mubr.f32.mxu1 %v2659_v12 }
 0x5c7   : > { %1506 = vmatmul.mubr.f32.gmra.mrb[12].mxu1 %v1386_v13 }
 0x5c8   : > { %1511 = vmatprep.mubr.f32.mxu1 %v2659_v12 }
 0x5cb   : > { %1512 = vmatmul.mubr.f32.gmra.mrb[14].mxu1 %v1387_v52 }
 0x692   : > { %v1495_v15 = vpop.f32.mrb[8].mxu1 }
 0x693   : > { %v1496_v58 = vadd.f32 %v1495_v15, %v1421_v61  ;;  %v1497_v7 = vpop.f32.mrb[9].mxu1 }
 0x694   : > { %v1498_v21 = vadd.f32 %v1497_v7, %v1422_v62 }
 0x695   : > { %v1526_v25 = vmin.f32 %v1496_v58, 0.0  ;;  %vm1518_vm3 = vcmp.gt.f32.partialorder %v1496_v58, 0.0 }
 0x696   : > { %v1527_v27 = vmin.f32 %v1498_v21, 0.0  ;;  %v1501_v26 = vpop.f32.mrb[10].mxu1  ;;  %vm1519_vm7 = vcmp.gt.f32.partialorder %v1498_v21, 0.0 }
 0x697   : > { %v1534_v55 = vmul.f32 1.442695, %v1526_v25  ;;  %v1502_v20 = vadd.f32 %v1501_v26, %v1423_v2  ;;  %v1503_v23 = vpop.f32.mrb[11].mxu1 }
 0x698   : > { %v1536_v8 = vmul.f32 1.442695, %v1527_v27  ;;  %v1504_v28 = vadd.f32 %v1503_v23, %v1424_v19 }
 0x699   : > { %2459 = vpow2.f32 %v1534_v55  ;;  %v1528_v12 = vmin.f32 %v1502_v20, 0.0  ;;  %vm1520_vm10 = vcmp.gt.f32.partialorder %v1502_v20, 0.0 }
 0x69a   : > { %2461 = vpow2.f32 %v1536_v8  ;;  %v1529_v31 = vmin.f32 %v1504_v28, 0.0  ;;  %v1507_v32 = vpop.f32.mrb[12].mxu1  ;;  %vm1521_vm9 = vcmp.gt.f32.partialorder %v1504_v28, 0.0 }
 0x69b   : > { %v1538_v4 = vmul.f32 1.442695, %v1528_v12  ;;  %v1508_v30 = vadd.f32 %v1507_v32, %v1425_v33  ;;  %v1509_v38 = vpop.f32.mrb[13].mxu1 }
 0x69c   : > { %v1540_v35 = vmul.f32 1.442695, %v1529_v31  ;;  %v1510_v36 = vadd.f32 %v1509_v38, %v1426_v29 }
 0x69d   : > { %2463 = vpow2.f32 %v1538_v4  ;;  %v1530_v37 = vmin.f32 %v1508_v30, 0.0  ;;  %vm1522_vm1 = vcmp.gt.f32.partialorder %v1508_v30, 0.0 }
 0x69e   : > { %2465 = vpow2.f32 %v1540_v35  ;;  %v1531_v41 = vmin.f32 %v1510_v36, 0.0  ;;  %v1513_v39 = vpop.f32.mrb[14].mxu1  ;;  %vm1523_vm2 = vcmp.gt.f32.partialorder %v1510_v36, 0.0 }
 0x69f   : > { %v1542_v44 = vmul.f32 1.442695, %v1530_v37  ;;  %v1514_v0 = vadd.f32 %v1513_v39, %v1427_v9  ;;  %v1515_v43 = vpop.f32.mrb[15].mxu1 }
 0x6a0   : > { %v1544_v45 = vmul.f32 1.442695, %v1531_v41  ;;  %v3467_v5 = vadd.f32 %v1515_v43, %v1428_v40 }
 0x6a1   : > { %2467 = vpow2.f32 %v1542_v44  ;;  %v1532_v46 = vmin.f32 %v1514_v0, 0.0  ;;  %vm1524_vm6 = vcmp.gt.f32.partialorder %v1514_v0, 0.0 }
 0x6a2   : > { %2469 = vpow2.f32 %v1544_v45  ;;  %v1533_v47 = vmin.f32 %v3467_v5, 0.0  ;;  %vm1525_vm13 = vcmp.gt.f32.partialorder %v3467_v5, 0.0 }
 0x6a3   : > { %v2460_v48 = vpop.eup %2459  ;;  %v1546_v49 = vmul.f32 1.442695, %v1532_v46 }
 0x6a4   : > { %v2462_v51 = vpop.eup %2461  ;;  %v1781_v1 = vadd.f32 -1.0, %v2460_v48  ;;  %v1548_v50 = vmul.f32 1.442695, %v1533_v47 }
 0x6a5   : > { %v1782_v3 = vadd.f32 -1.0, %v2462_v51  ;;  %2471 = vpow2.f32 %v1546_v49 }
 0x6a6   : > { %v1558_v16 = vsel %vm1518_vm3, %v1496_v58, %v1781_v1  ;;  %2473 = vpow2.f32 %v1548_v50 }
 0x6a7   : > { %v2464_v24 = vpop.eup %2463  ;;  %v1566_v34 = vadd.f32 %v1558_v16, %v3191_v6  ;;  %v1559_v18 = vsel %vm1519_vm7, %v1498_v21, %v1782_v3 }
 0x6a8   : > { %v2466_v22 = vpop.eup %2465  ;;  %v3472_v42 = vadd.f32 %v1559_v18, %v3198_v10  ;;  %v1783_v53 = vadd.f32 -1.0, %v2464_v24 }
 0x6a9   : > { %v1582_v54 = vmin.f32 %v1566_v34, 0.0  ;;  %v1784_v14 = vadd.f32 -1.0, %v2466_v22  ;;  %vm1574_vm15 = vcmp.gt.f32.partialorder %v1566_v34, 0.0 }
 0x6aa   : > { %v1583_v60 = vmin.f32 %v3472_v42, 0.0  ;;  %v1560_v13 = vsel %vm1520_vm10, %v1502_v20, %v1783_v53  ;;  %vm1575_vm4 = vcmp.gt.f32.partialorder %v3472_v42, 0.0 }
 0x6ab   : > { %v2468_v52 = vpop.eup %2467  ;;  %v1590_v61 = vmul.f32 1.442695, %v1582_v54  ;;  %v1568_v62 = vadd.f32 %v1560_v13, %v3193_v63  ;;  %v1561_v15 = vsel %vm1521_vm9, %v1504_v28, %v1784_v14 }
 0x6ac   : > { %v2470_v58 = vpop.eup %2469  ;;  %v1592_v6 = vmul.f32 1.442695, %v1583_v60  ;;  %v1569_v7 = vadd.f32 %v1561_v15, %v3200_v11  ;;  %v1785_v21 = vadd.f32 -1.0, %v2468_v52 }
 0x6ad   : > { %2475 = vpow2.f32 %v1590_v61  ;;  %v1584_v10 = vmin.f32 %v1568_v62, 0.0  ;;  %v1786_v2 = vadd.f32 -1.0, %v2470_v58  ;;  %vm1576_vm5 = vcmp.gt.f32.partialorder %v1568_v62, 0.0 }
 0x6ae   : > { %2477 = vpow2.f32 %v1592_v6  ;;  %v1585_v25 = vmin.f32 %v1569_v7, 0.0  ;;  %v1562_v19 = vsel %vm1522_vm1, %v1508_v30, %v1785_v21  ;;  %vm1577_vm12 = vcmp.gt.f32.partialorder %v1569_v7, 0.0 }
 0x6af   : > { %v2472_v27 = vpop.eup %2471  ;;  %v1594_v26 = vmul.f32 1.442695, %v1584_v10  ;;  %v1570_v55 = vadd.f32 %v1562_v19, %v3206_v56  ;;  %v1563_v20 = vsel %vm1523_vm2, %v1510_v36, %v1786_v2 }
 0x6b0   : > { %v2474_v63 = vpop.eup %2473  ;;  %v1596_v23 = vmul.f32 1.442695, %v1585_v25  ;;  %v1571_v8 = vadd.f32 %v1563_v20, %v3212_v17  ;;  %v1787_v28 = vadd.f32 -1.0, %v2472_v27 }
 0x6b1   : > { %2479 = vpow2.f32 %v1594_v26  ;;  %v1586_v11 = vmin.f32 %v1570_v55, 0.0  ;;  %v1788_v33 = vadd.f32 -1.0, %v2474_v63  ;;  %vm1578_vm14 = vcmp.gt.f32.partialorder %v1570_v55, 0.0 }
 0x6b2   : > { %2481 = vpow2.f32 %v1596_v23  ;;  %v1587_v12 = vmin.f32 %v1571_v8, 0.0  ;;  %v1564_v29 = vsel %vm1524_vm6, %v1514_v0, %v1787_v28  ;;  %vm1579_vm8 = vcmp.gt.f32.partialorder %v1571_v8, 0.0 }
 0x6b3   : > { %v1598_v31 = vmul.f32 1.442695, %v1586_v11  ;;  %v1572_v32 = vadd.f32 %v1564_v29, %v3208_v59  ;;  %v1565_v56 = vsel %vm1525_vm13, %v3467_v5, %v1788_v33 }
 0x6b4   : > { %v1600_v4 = vmul.f32 1.442695, %v1587_v12  ;;  %v1573_v30 = vadd.f32 %v1565_v56, %v3214_v57 }
 0x6b5   : > { %2483 = vpow2.f32 %v1598_v31  ;;  %v1588_v17 = vmin.f32 %v1572_v32, 0.0  ;;  %vm1580_vm11 = vcmp.gt.f32.partialorder %v1572_v32, 0.0 }
 0x6b6   : > { %2485 = vpow2.f32 %v1600_v4  ;;  %v1589_v38 = vmin.f32 %v1573_v30, 0.0  ;;  %vm1581_vm0 = vcmp.gt.f32.partialorder %v1573_v30, 0.0 }
 0x6b7   : > { %v2476_v35 = vpop.eup %2475  ;;  %v1602_v36 = vmul.f32 1.442695, %v1588_v17 }
 0x6b8   : > { %v2478_v9 = vpop.eup %2477  ;;  %v1789_v37 = vadd.f32 -1.0, %v2476_v35  ;;  %v1604_v40 = vmul.f32 1.442695, %v1589_v38 }
 0x6b9   : > { %v1790_v41 = vadd.f32 -1.0, %v2478_v9  ;;  %2487 = vpow2.f32 %v1602_v36 }
 0x6ba   : > { %v1614_v39 = vsel %vm1574_vm15, %v1566_v34, %v1789_v37  ;;  %2489 = vpow2.f32 %v1604_v40 }
 0x6bb   : > { %v2480_v59 = vpop.eup %2479  ;;  %1622 = vst [vmem:[%s3486_s27] sm:$0xff] %v1614_v39  ;;  %v1615_v57 = vsel %vm1575_vm4, %v3472_v42, %v1790_v41 }
 0x6bc   : > { %v2482_v44 = vpop.eup %2481  ;;  %1623 = vst [vmem:[%s3486_s27 + $0x8] sm:$0xff] %v1615_v57  ;;  %v1791_v0 = vadd.f32 -1.0, %v2480_v59 }
 0x6bd   : > { %v1792_v43 = vadd.f32 -1.0, %v2482_v44 }
 0x6be   : > { %v1616_v45 = vsel %vm1576_vm5, %v1568_v62, %v1791_v0 }
 0x6bf   : > { %v2484_v5 = vpop.eup %2483  ;;  %1624 = vst [vmem:[%s3486_s27 + $0x10] sm:$0xff] %v1616_v45  ;;  %v1617_v46 = vsel %vm1577_vm12, %v1569_v7, %v1792_v43 }
 0x6c0   : > { %v2486_v47 = vpop.eup %2485  ;;  %1625 = vst [vmem:[%s3486_s27 + $0x18] sm:$0xff] %v1617_v46  ;;  %v1793_v48 = vadd.f32 -1.0, %v2484_v5 }
 0x6c1   : > { %v1794_v49 = vadd.f32 -1.0, %v2486_v47 }
 0x6c2   : > { %v1618_v51 = vsel %vm1578_vm14, %v1570_v55, %v1793_v48 }
 0x6c3   : > { %v2488_v1 = vpop.eup %2487  ;;  %1626 = vst [vmem:[%s3486_s27 + $0x20] sm:$0xff] %v1618_v51  ;;  %v1619_v50 = vsel %vm1579_vm8, %v1571_v8, %v1794_v49 }
 0x6c4   : > { %v2490_v3 = vpop.eup %2489  ;;  %1627 = vst [vmem:[%s3486_s27 + $0x28] sm:$0xff] %v1619_v50  ;;  %v1795_v16 = vadd.f32 -1.0, %v2488_v1 }
 0x6c5   : > { %v1796_v24 = vadd.f32 -1.0, %v2490_v3 }
 0x6c6   : > { %v1620_v34 = vsel %vm1580_vm11, %v1572_v32, %v1795_v16 }
 0x6c7   : > { %1628 = vst [vmem:[%s3486_s27 + $0x30] sm:$0xff] %v1620_v34  ;;  %v1621_v18 = vsel %vm1581_vm0, %v1573_v30, %v1796_v24 }
 0x6c8   : > { %1629 = vst [vmem:[%s3486_s27 + $0x38] sm:$0xff] %v1621_v18 }
 0x6c9   : > { %2590 = shalt.err (!%p2587_p2)
}
 0x6ca   : > { %s2591_s7 = scalar_lea.hbm %s3500_s10, 1024  ;;  %s2595_s20 = scalar_lea.hbm %s3551_s3, 2048 }
 0x6cb   : > { %p2592_p13 = scmp.ne.s32.totalorder %s3500_s10, %s2591_s7  ;;  %p2596_p4 = scmp.lt.u32.totalorder %s3500_s10, %s3551_s3 }
 0x6cc   : > { %p2597_p7 = scmp.lt.u32.totalorder %s2595_s20, %s2591_s7  ;;  %p2599_p11 = scmp.lt.u32.totalorder %s2591_s7, %s3500_s10 }
 0x6cd   : > { %p2593_p6 = pnand %p2592_p13, %p3585_p0 }
 0x6ce   : > { %p2598_p8 = por %p2597_p7, %p2596_p4 }
 0x6cf   : > { %p2594_p10 = pneg %p2593_p6 }
 0x6d0   : > { %p2600_p1 = por %p2599_p11, %p2598_p8 }
 0x6d2   : > { %p2601_p3 = pnand %p2600_p1, %p2594_p10 }
 0x6d4   : > { %2604 = shalt.err (!%p2601_p3)
}
 0x6d5   : > { %s2663_s24 = smov 256   ;;  %s2664_s27 = smov 16  }
 0x6d6   : > { %2086 = dma.vmem_to_hbm [thread:$0]  (%p3585_p0), %s3502_s8, 1024, %s3500_s10, %s1631_s16, %s2663_s24, %s2663_s24, %s2664_s27  }
 0x6d7 PF: > { %s1659_s22 = sand.u32 1, %s2635_s12   ;;  %p3586_p5 = scmp.ne.s32.totalorder %s3556_s19, 0 }
 0x6d8   : > { %p3587_p9 = scmp.ge.s32.totalorder %s2647_s15, 2  ;;  %s1660_s11 = scalar_lea.sflag [#allocation5], %s1659_s22 }
 0x6da   : > { %p2100_p12 = pnand %p3587_p9, %p3586_p5 }
 0x6dc   : > { %2630 = dma.done.wait (!%p2100_p12), %s1660_s11, 1024  }
 0x6dd   : > { %2632 = vsyncadd (!%p2100_p12), %s1660_s11, 4294966272  ;;  %p17_p2 = scmp.ge.s32.totalorder %s2798_s6, 4   ;;  %s3588_s12 = smov %s2639_s13 }
 0x6de   : > { %s3589_s13 = smov %s2643_s14  ;;  %s3590_s14 = smov %s2807_s9 }
 0x6df   : > { %s3591_s15 = smov %s2798_s6  ;;  %19 = sbr.rel (!%p17_p2) target bundleno = 6 (0x6), region = 91 }
 0x6e6   :  { %1665 = vsyncpa [#allocation4], 1 }
 0x6e7   :  { %1667 = vsyncpa [#allocation4 + $0x1], 1 }
 0x6e8   :  { %1668 = vsyncpa [#allocation7], 1 }
 0x6e9   :  { %1669 = vsyncpa [#allocation5], 1 }
 0x6ea   :  { %1671 = vsyncpa [#allocation5 + $0x1], 1 }

</bundles_post_ra>
